<compile_context>
chip_gen: v7x
topology: tpu7x:2x2x1
jax: 0.10.0
libtpu: 0.0.40
codegen_flags: <defaults>
</compile_context>

<pallas_src>
import numpy as np
import jax
import jax.numpy as jnp
from jax import lax
from jax.experimental import pallas as pl
from jax.experimental.pallas import tpu as pltpu


def _layer_norm_f32(y, gamma, beta, eps=1e-6):
    # Single-pass statistics: sum and sum-of-squares are independent XLU
    # reductions (no dependent centered second pass).
    # NOTE: module explicitly uses eps=1e-06 (not the nn.LayerNorm default 1e-5).
    inv_n = 1.0 / y.shape[-1]
    s1 = jnp.sum(y, axis=-1, keepdims=True)
    s2 = jnp.sum(y * y, axis=-1, keepdims=True)
    mean = s1 * inv_n
    var = s2 * inv_n - mean * mean
    return (y - mean) * lax.rsqrt(var + eps) * gamma + beta


def _make_kernel(num_heads):
    def kernel(xf_ref, xq_ref, mask_ref,
               wq_ref, bq_ref, wk_ref, bk_ref, wv_ref, bv_ref,
               wo_ref, bo_ref,
               g1_ref, be1_ref,
               w1_ref, b1_ref, w2_ref, b2_ref,
               g2_ref, be2_ref,
               out_ref):
        xf = xf_ref[0]                       # (S, D)   full sequence (K/V source)
        xq = xq_ref[0]                       # (tq, D)  query rows / residual rows
        d_model = xf.shape[-1]
        depth = d_model // num_heads
        scale = float(1.0 / np.sqrt(depth))
        bf16 = jnp.bfloat16

        # Hoisted: additive mask computed once, reused by every head.
        neg_mask = mask_ref[...] * (-1e9)    # (tq, S), f32

        xf_b = xf.astype(bf16)
        xq_b = xq.astype(bf16)

        # --- QKV projections: bf16 MXU operands, f32 accumulation ---
        q = jnp.dot(xq_b, wq_ref[...], preferred_element_type=jnp.float32) + bq_ref[...]
        k = jnp.dot(xf_b, wk_ref[...], preferred_element_type=jnp.float32) + bk_ref[...]
        v = jnp.dot(xf_b, wv_ref[...], preferred_element_type=jnp.float32) + bv_ref[...]
        # Fold 1/sqrt(depth) into q once (bias included, same math as ref).
        q = q * scale

        wo = wo_ref[...]                     # bf16 (D, D)

        # Per-head attention.  Head loop is unrolled (small H); scores contract
        # the last dims directly (no k transpose) and the output projection is
        # accumulated per head (no lane-dim concatenate).
        # TODO(synk): for production shapes (long S, depth >= 128) move heads to
        # a grid axis and use an online-softmax KV-tile loop (flash pattern).
        attn_out = None
        for h in range(num_heads):
            sl = slice(h * depth, (h + 1) * depth)
            qh = q[:, sl].astype(bf16)       # (tq, depth)
            kh = k[:, sl].astype(bf16)       # (S, depth)
            vh = v[:, sl].astype(bf16)       # (S, depth)

            # (tq, depth) x (S, depth) contracting last dims -> (tq, S)
            logits = lax.dot_general(qh, kh, (((1,), (1,)), ((), ())),
                                     preferred_element_type=jnp.float32)
            logits = logits + neg_mask
            m = jnp.max(logits, axis=-1, keepdims=True)
            e = jnp.exp(logits - m)
            denom = jnp.sum(e, axis=-1, keepdims=True)
            attn = e * pl.reciprocal(denom, approx=True)   # divide on the EUP

            ctx = jnp.dot(attn.astype(bf16), vh,
                          preferred_element_type=jnp.float32)          # (tq, depth)
            part = jnp.dot(ctx.astype(bf16), wo[sl, :],
                           preferred_element_type=jnp.float32)         # (tq, D)
            attn_out = part if attn_out is None else attn_out + part
        attn_out = attn_out + bo_ref[...]

        # dropout1 -> identity (eval mode)
        out1 = _layer_norm_f32(xq + attn_out, g1_ref[...], be1_ref[...])

        # --- point-wise feed-forward (bf16 MXU, f32 accum / elementwise) ---
        h1 = jnp.maximum(
            jnp.dot(out1.astype(bf16), w1_ref[...],
                    preferred_element_type=jnp.float32) + b1_ref[...], 0.0)
        ffn = (jnp.dot(h1.astype(bf16), w2_ref[...],
                       preferred_element_type=jnp.float32) + b2_ref[...])

        # dropout2 -> identity (eval mode)
        out2 = _layer_norm_f32(out1 + ffn, g2_ref[...], be2_ref[...])
        out_ref[0] = out2.astype(out_ref.dtype)

    return kernel


def encoder_layer(x, mask, params, num_heads):
    B, S, D = x.shape
    kernel = _make_kernel(num_heads)

    # q-row tile: 128 rows when S allows it, else the full sequence.
    tq = 128 if (S % 128 == 0) else S
    n_qt = S // tq

    # Cast matmul weights to bf16 once in the wrapper (halves weight DMA and
    # feeds the MXU at its native precision); biases / LN params stay f32.
    bf16_names = {"wq", "wk", "wv", "wo", "w1", "w2"}
    weight_order = ["wq", "bq", "wk", "bk", "wv", "bv", "wo", "bo",
                    "g1", "be1", "w1", "b1", "w2", "b2", "g2", "be2"]
    weights = [params[n].astype(jnp.bfloat16) if n in bf16_names else params[n]
               for n in weight_order]

    def const_spec(a):
        # Constant index map: weight stays resident in VMEM across the grid.
        # TODO(synk): at production sizes single-buffer these constant-index
        # weight specs (pipeline_mode=pl.Buffered(1)) to halve their VMEM
        # footprint on v7x (64 MiB VMEM).
        return pl.BlockSpec(a.shape, lambda b, t: (0,) * a.ndim)

    in_specs = ([pl.BlockSpec((1, S, D), lambda b, t: (b, 0, 0)),    # full x (K/V)
                 pl.BlockSpec((1, tq, D), lambda b, t: (b, t, 0)),   # q rows / residual
                 pl.BlockSpec((tq, S), lambda b, t: (t, 0))]         # mask rows
                + [const_spec(w) for w in weights])

    mask_f32 = mask.astype(jnp.float32)

    return pl.pallas_call(
        kernel,
        out_shape=jax.ShapeDtypeStruct((B, S, D), x.dtype),
        grid_spec=pltpu.PrefetchScalarGridSpec(
            num_scalar_prefetch=0,
            grid=(B, n_qt),
            in_specs=in_specs,
            out_specs=pl.BlockSpec((1, tq, D), lambda b, t: (b, t, 0)),
        ),
        compiler_params=pltpu.CompilerParams(
            dimension_semantics=("parallel", "parallel"),
            vmem_limit_bytes=32 * 1024 * 1024),
    )(x, x, mask_f32, *weights)


def _layer_norm_ref(y, gamma, beta, eps=1e-6):
    mean = jnp.mean(y, axis=-1, keepdims=True)
    var = jnp.mean((y - mean) ** 2, axis=-1, keepdims=True)
    return (y - mean) * lax.rsqrt(var + eps) * gamma + beta


def _reference(x, mask, params, num_heads):
    """Pure-JAX f32 reference replicating the PyTorch forward (eval mode)."""
    B, S, D = x.shape
    depth = D // num_heads
    q = x @ params["wq"] + params["bq"]
    k = x @ params["wk"] + params["bk"]
    v = x @ params["wv"] + params["bv"]

    def split(t):
        return t.reshape(B, S, num_heads, depth).transpose(0, 2, 1, 3)

    qh, kh, vh = split(q), split(k), split(v)
    logits = jnp.einsum("bhqd,bhkd->bhqk", qh, kh) / jnp.sqrt(jnp.float32(depth))
    logits = logits + mask[None, None] * (-1e9)
    attn = jax.nn.softmax(logits, axis=-1)
    ctx = jnp.einsum("bhqk,bhkd->bhqd", attn, vh)
    concat = ctx.transpose(0, 2, 1, 3).reshape(B, S, D)
    attn_out = concat @ params["wo"] + params["bo"]
    out1 = _layer_norm_ref(x + attn_out, params["g1"], params["be1"])
    ffn = jnp.maximum(out1 @ params["w1"] + params["b1"], 0.0) @ params["w2"] + params["b2"]
    return _layer_norm_ref(out1 + ffn, params["g2"], params["be2"])


if __name__ == "__main__":
    B, S, D, H, DFF = 2, 8, 32, 4, 64

    key = jax.random.PRNGKey(0)
    keys = jax.random.split(key, 16)

    def init(k, shape, scale=0.02):
        return jax.random.normal(k, shape, dtype=jnp.float32) * scale

    params = {
        "wq": init(keys[0], (D, D)), "bq": init(keys[1], (1, D)),
        "wk": init(keys[2], (D, D)), "bk": init(keys[3], (1, D)),
        "wv": init(keys[4], (D, D)), "bv": init(keys[5], (1, D)),
        "wo": init(keys[6], (D, D)), "bo": init(keys[7], (1, D)),
        "g1": jnp.ones((1, D), jnp.float32), "be1": jnp.zeros((1, D), jnp.float32),
        "w1": init(keys[8], (D, DFF)), "b1": init(keys[9], (1, DFF)),
        "w2": init(keys[10], (DFF, D)), "b2": init(keys[11], (1, D)),
        "g2": jnp.ones((1, D), jnp.float32), "be2": jnp.zeros((1, D), jnp.float32),
    }

    x = jax.random.normal(keys[12], (B, S, D), dtype=jnp.float32)
    # padding-style mask: last two key positions masked out
    mask = jnp.zeros((S, S), jnp.float32).at[:, -2:].set(1.0)

    out = encoder_layer(x, mask, params, num_heads=H)
    out = jax.block_until_ready(out)

    ref = _reference(x, mask, params, num_heads=H)
    # Tolerance accounts for bf16 MXU operands + approx EUP reciprocal
    # (f32 accumulation / softmax / LayerNorm keep the error well below this).
    np.testing.assert_allclose(np.asarray(out), np.asarray(ref),
                               rtol=1e-2, atol=1e-2)
    print("KERNEL_OK")
</pallas_src>

<mosaic_0001>
module attributes {stable_mosaic.version = 11 : i64} {
  func.func @kernel(%arg0: i32, %arg1: i32, %arg2: memref<1x8x32xf32, #tpu.memory_space<vmem>>, %arg3: memref<1x8x32xf32, #tpu.memory_space<vmem>>, %arg4: memref<8x8xf32, #tpu.memory_space<vmem>>, %arg5: memref<32x32xbf16, #tpu.memory_space<vmem>>, %arg6: memref<1x32xf32, #tpu.memory_space<vmem>>, %arg7: memref<32x32xbf16, #tpu.memory_space<vmem>>, %arg8: memref<1x32xf32, #tpu.memory_space<vmem>>, %arg9: memref<32x32xbf16, #tpu.memory_space<vmem>>, %arg10: memref<1x32xf32, #tpu.memory_space<vmem>>, %arg11: memref<32x32xbf16, #tpu.memory_space<vmem>>, %arg12: memref<1x32xf32, #tpu.memory_space<vmem>>, %arg13: memref<1x32xf32, #tpu.memory_space<vmem>>, %arg14: memref<1x32xf32, #tpu.memory_space<vmem>>, %arg15: memref<32x64xbf16, #tpu.memory_space<vmem>>, %arg16: memref<1x64xf32, #tpu.memory_space<vmem>>, %arg17: memref<64x32xbf16, #tpu.memory_space<vmem>>, %arg18: memref<1x32xf32, #tpu.memory_space<vmem>>, %arg19: memref<1x32xf32, #tpu.memory_space<vmem>>, %arg20: memref<1x32xf32, #tpu.memory_space<vmem>>, %arg21: memref<1x8x32xf32, #tpu.memory_space<vmem>>) attributes {dimension_semantics = [#tpu.dimension_semantics<parallel>, #tpu.dimension_semantics<parallel>], iteration_bounds = array<i64: 2, 1>, scalar_prefetch = 0 : i64, scratch_operands = 0 : i64, tpu.core_type = #tpu.core_type<tc>, window_params = [{transform_indices = @transform_0, window_bounds = array<i64: 1, 8, 32>}, {transform_indices = @transform_1, window_bounds = array<i64: 1, 8, 32>}, {transform_indices = @transform_2, window_bounds = array<i64: 8, 8>}, {pipeline_mode = #tpu.pipeline_mode<synchronous>, transform_indices = @transform_3, window_bounds = array<i64: 32, 32>}, {pipeline_mode = #tpu.pipeline_mode<synchronous>, transform_indices = @transform_4, window_bounds = array<i64: 1, 32>}, {pipeline_mode = #tpu.pipeline_mode<synchronous>, transform_indices = @transform_5, window_bounds = array<i64: 32, 32>}, {pipeline_mode = #tpu.pipeline_mode<synchronous>, transform_indices = @transform_6, window_bounds = array<i64: 1, 32>}, {pipeline_mode = #tpu.pipeline_mode<synchronous>, transform_indices = @transform_7, window_bounds = array<i64: 32, 32>}, {pipeline_mode = #tpu.pipeline_mode<synchronous>, transform_indices = @transform_8, window_bounds = array<i64: 1, 32>}, {pipeline_mode = #tpu.pipeline_mode<synchronous>, transform_indices = @transform_9, window_bounds = array<i64: 32, 32>}, {pipeline_mode = #tpu.pipeline_mode<synchronous>, transform_indices = @transform_10, window_bounds = array<i64: 1, 32>}, {pipeline_mode = #tpu.pipeline_mode<synchronous>, transform_indices = @transform_11, window_bounds = array<i64: 1, 32>}, {pipeline_mode = #tpu.pipeline_mode<synchronous>, transform_indices = @transform_12, window_bounds = array<i64: 1, 32>}, {pipeline_mode = #tpu.pipeline_mode<synchronous>, transform_indices = @transform_13, window_bounds = array<i64: 32, 64>}, {pipeline_mode = #tpu.pipeline_mode<synchronous>, transform_indices = @transform_14, window_bounds = array<i64: 1, 64>}, {pipeline_mode = #tpu.pipeline_mode<synchronous>, transform_indices = @transform_15, window_bounds = array<i64: 64, 32>}, {pipeline_mode = #tpu.pipeline_mode<synchronous>, transform_indices = @transform_16, window_bounds = array<i64: 1, 32>}, {pipeline_mode = #tpu.pipeline_mode<synchronous>, transform_indices = @transform_17, window_bounds = array<i64: 1, 32>}, {pipeline_mode = #tpu.pipeline_mode<synchronous>, transform_indices = @transform_18, window_bounds = array<i64: 1, 32>}, {transform_indices = @transform_19, window_bounds = array<i64: 1, 8, 32>}]} {
    %c0 = arith.constant 0 : index
    %c0_0 = arith.constant 0 : index
    %c0_1 = arith.constant 0 : index
    %0 = vector.load %arg2[%c0, %c0_0, %c0_1] : memref<1x8x32xf32, #tpu.memory_space<vmem>>, vector<1x8x32xf32>
    %1 = vector.shape_cast %0 : vector<1x8x32xf32> to vector<8x32xf32>
    %c0_2 = arith.constant 0 : index
    %c0_3 = arith.constant 0 : index
    %c0_4 = arith.constant 0 : index
    %2 = vector.load %arg3[%c0_2, %c0_3, %c0_4] : memref<1x8x32xf32, #tpu.memory_space<vmem>>, vector<1x8x32xf32>
    %3 = vector.shape_cast %2 : vector<1x8x32xf32> to vector<8x32xf32>
    %c0_5 = arith.constant 0 : index
    %c0_6 = arith.constant 0 : index
    %4 = vector.load %arg4[%c0_5, %c0_6] : memref<8x8xf32, #tpu.memory_space<vmem>>, vector<8x8xf32>
    %cst = arith.constant -1.000000e+09 : f32
    %5 = vector.broadcast %cst : f32 to vector<8x8xf32>
    %6 = arith.mulf %4, %5 : vector<8x8xf32>
    %7 = arith.truncf %1 : vector<8x32xf32> to vector<8x32xbf16>
    %8 = arith.truncf %3 : vector<8x32xf32> to vector<8x32xbf16>
    %c0_7 = arith.constant 0 : index
    %c0_8 = arith.constant 0 : index
    %9 = vector.load %arg5[%c0_7, %c0_8] : memref<32x32xbf16, #tpu.memory_space<vmem>>, vector<32x32xbf16>
    %cst_9 = arith.constant dense<0.000000e+00> : vector<8x32xf32>
    %10 = tpu.matmul %8, %9, %cst_9 {dimension_numbers = #tpu.dot_dimension_numbers<[1], [0], [0], [1], [0, 0, 1, 1], [], []>} : vector<8x32xbf16>, vector<32x32xbf16>, vector<8x32xf32> -> vector<8x32xf32>
    %c0_10 = arith.constant 0 : index
    %c0_11 = arith.constant 0 : index
    %11 = vector.load %arg6[%c0_10, %c0_11] : memref<1x32xf32, #tpu.memory_space<vmem>>, vector<1x32xf32>
    %12 = vector.broadcast %11 : vector<1x32xf32> to vector<8x32xf32>
    %13 = arith.addf %10, %12 : vector<8x32xf32>
    %c0_12 = arith.constant 0 : index
    %c0_13 = arith.constant 0 : index
    %14 = vector.load %arg7[%c0_12, %c0_13] : memref<32x32xbf16, #tpu.memory_space<vmem>>, vector<32x32xbf16>
    %cst_14 = arith.constant dense<0.000000e+00> : vector<8x32xf32>
    %15 = tpu.matmul %7, %14, %cst_14 {dimension_numbers = #tpu.dot_dimension_numbers<[1], [0], [0], [1], [0, 0, 1, 1], [], []>} : vector<8x32xbf16>, vector<32x32xbf16>, vector<8x32xf32> -> vector<8x32xf32>
    %c0_15 = arith.constant 0 : index
    %c0_16 = arith.constant 0 : index
    %16 = vector.load %arg8[%c0_15, %c0_16] : memref<1x32xf32, #tpu.memory_space<vmem>>, vector<1x32xf32>
    %17 = vector.broadcast %16 : vector<1x32xf32> to vector<8x32xf32>
    %18 = arith.addf %15, %17 : vector<8x32xf32>
    %c0_17 = arith.constant 0 : index
    %c0_18 = arith.constant 0 : index
    %19 = vector.load %arg9[%c0_17, %c0_18] : memref<32x32xbf16, #tpu.memory_space<vmem>>, vector<32x32xbf16>
    %cst_19 = arith.constant dense<0.000000e+00> : vector<8x32xf32>
    %20 = tpu.matmul %7, %19, %cst_19 {dimension_numbers = #tpu.dot_dimension_numbers<[1], [0], [0], [1], [0, 0, 1, 1], [], []>} : vector<8x32xbf16>, vector<32x32xbf16>, vector<8x32xf32> -> vector<8x32xf32>
    %c0_20 = arith.constant 0 : index
    %c0_21 = arith.constant 0 : index
    %21 = vector.load %arg10[%c0_20, %c0_21] : memref<1x32xf32, #tpu.memory_space<vmem>>, vector<1x32xf32>
    %22 = vector.broadcast %21 : vector<1x32xf32> to vector<8x32xf32>
    %23 = arith.addf %20, %22 : vector<8x32xf32>
    %cst_22 = arith.constant 0.353553385 : f32
    %24 = vector.broadcast %cst_22 : f32 to vector<8x32xf32>
    %25 = arith.mulf %13, %24 : vector<8x32xf32>
    %c0_23 = arith.constant 0 : index
    %c0_24 = arith.constant 0 : index
    %26 = vector.load %arg11[%c0_23, %c0_24] : memref<32x32xbf16, #tpu.memory_space<vmem>>, vector<32x32xbf16>
    %27 = vector.extract_strided_slice %25 {offsets = [0, 0], sizes = [8, 8], strides = [1, 1]} : vector<8x32xf32> to vector<8x8xf32>
    %28 = arith.truncf %27 : vector<8x8xf32> to vector<8x8xbf16>
    %29 = vector.extract_strided_slice %18 {offsets = [0, 0], sizes = [8, 8], strides = [1, 1]} : vector<8x32xf32> to vector<8x8xf32>
    %30 = arith.truncf %29 : vector<8x8xf32> to vector<8x8xbf16>
    %31 = vector.extract_strided_slice %23 {offsets = [0, 0], sizes = [8, 8], strides = [1, 1]} : vector<8x32xf32> to vector<8x8xf32>
    %32 = arith.truncf %31 : vector<8x8xf32> to vector<8x8xbf16>
    %cst_25 = arith.constant dense<0.000000e+00> : vector<8x8xf32>
    %33 = tpu.matmul %28, %30, %cst_25 {dimension_numbers = #tpu.dot_dimension_numbers<[1], [1], [0], [0], [0, 0, 1, 0], [], []>} : vector<8x8xbf16>, vector<8x8xbf16>, vector<8x8xf32> -> vector<8x8xf32>
    %34 = arith.addf %33, %6 : vector<8x8xf32>
    %cst_26 = arith.constant dense<0xFF800000> : vector<8xf32>
    %35 = vector.multi_reduction <maximumf>, %34, %cst_26 [1] : vector<8x8xf32> to vector<8xf32>
    %36 = vector.shape_cast %35 : vector<8xf32> to vector<8x1xf32>
    %37 = vector.broadcast %36 : vector<8x1xf32> to vector<8x8xf32>
    %38 = arith.subf %34, %37 : vector<8x8xf32>
    %39 = math.exp %38 : vector<8x8xf32>
    %cst_27 = arith.constant dense<0.000000e+00> : vector<8xf32>
    %40 = vector.multi_reduction <add>, %39, %cst_27 [1] : vector<8x8xf32> to vector<8xf32>
    %41 = vector.shape_cast %40 : vector<8xf32> to vector<8x1xf32>
    %42 = tpu.reciprocal %41 {approx = true} : vector<8x1xf32> -> vector<8x1xf32>
    %43 = vector.broadcast %42 : vector<8x1xf32> to vector<8x8xf32>
    %44 = arith.mulf %39, %43 : vector<8x8xf32>
    %45 = arith.truncf %44 : vector<8x8xf32> to vector<8x8xbf16>
    %cst_28 = arith.constant dense<0.000000e+00> : vector<8x8xf32>
    %46 = tpu.matmul %45, %32, %cst_28 {dimension_numbers = #tpu.dot_dimension_numbers<[1], [0], [0], [1], [0, 0, 1, 1], [], []>} : vector<8x8xbf16>, vector<8x8xbf16>, vector<8x8xf32> -> vector<8x8xf32>
    %47 = arith.truncf %46 : vector<8x8xf32> to vector<8x8xbf16>
    %48 = vector.extract_strided_slice %26 {offsets = [0, 0], sizes = [8, 32], strides = [1, 1]} : vector<32x32xbf16> to vector<8x32xbf16>
    %cst_29 = arith.constant dense<0.000000e+00> : vector<8x32xf32>
    %49 = tpu.matmul %47, %48, %cst_29 {dimension_numbers = #tpu.dot_dimension_numbers<[1], [0], [0], [1], [0, 0, 1, 1], [], []>} : vector<8x8xbf16>, vector<8x32xbf16>, vector<8x32xf32> -> vector<8x32xf32>
    %50 = vector.extract_strided_slice %25 {offsets = [0, 8], sizes = [8, 8], strides = [1, 1]} : vector<8x32xf32> to vector<8x8xf32>
    %51 = arith.truncf %50 : vector<8x8xf32> to vector<8x8xbf16>
    %52 = vector.extract_strided_slice %18 {offsets = [0, 8], sizes = [8, 8], strides = [1, 1]} : vector<8x32xf32> to vector<8x8xf32>
    %53 = arith.truncf %52 : vector<8x8xf32> to vector<8x8xbf16>
    %54 = vector.extract_strided_slice %23 {offsets = [0, 8], sizes = [8, 8], strides = [1, 1]} : vector<8x32xf32> to vector<8x8xf32>
    %55 = arith.truncf %54 : vector<8x8xf32> to vector<8x8xbf16>
    %cst_30 = arith.constant dense<0.000000e+00> : vector<8x8xf32>
    %56 = tpu.matmul %51, %53, %cst_30 {dimension_numbers = #tpu.dot_dimension_numbers<[1], [1], [0], [0], [0, 0, 1, 0], [], []>} : vector<8x8xbf16>, vector<8x8xbf16>, vector<8x8xf32> -> vector<8x8xf32>
    %57 = arith.addf %56, %6 : vector<8x8xf32>
    %cst_31 = arith.constant dense<0xFF800000> : vector<8xf32>
    %58 = vector.multi_reduction <maximumf>, %57, %cst_31 [1] : vector<8x8xf32> to vector<8xf32>
    %59 = vector.shape_cast %58 : vector<8xf32> to vector<8x1xf32>
    %60 = vector.broadcast %59 : vector<8x1xf32> to vector<8x8xf32>
    %61 = arith.subf %57, %60 : vector<8x8xf32>
    %62 = math.exp %61 : vector<8x8xf32>
    %cst_32 = arith.constant dense<0.000000e+00> : vector<8xf32>
    %63 = vector.multi_reduction <add>, %62, %cst_32 [1] : vector<8x8xf32> to vector<8xf32>
    %64 = vector.shape_cast %63 : vector<8xf32> to vector<8x1xf32>
    %65 = tpu.reciprocal %64 {approx = true} : vector<8x1xf32> -> vector<8x1xf32>
    %66 = vector.broadcast %65 : vector<8x1xf32> to vector<8x8xf32>
    %67 = arith.mulf %62, %66 : vector<8x8xf32>
    %68 = arith.truncf %67 : vector<8x8xf32> to vector<8x8xbf16>
    %cst_33 = arith.constant dense<0.000000e+00> : vector<8x8xf32>
    %69 = tpu.matmul %68, %55, %cst_33 {dimension_numbers = #tpu.dot_dimension_numbers<[1], [0], [0], [1], [0, 0, 1, 1], [], []>} : vector<8x8xbf16>, vector<8x8xbf16>, vector<8x8xf32> -> vector<8x8xf32>
    %70 = arith.truncf %69 : vector<8x8xf32> to vector<8x8xbf16>
    %71 = vector.extract_strided_slice %26 {offsets = [8, 0], sizes = [8, 32], strides = [1, 1]} : vector<32x32xbf16> to vector<8x32xbf16>
    %cst_34 = arith.constant dense<0.000000e+00> : vector<8x32xf32>
    %72 = tpu.matmul %70, %71, %cst_34 {dimension_numbers = #tpu.dot_dimension_numbers<[1], [0], [0], [1], [0, 0, 1, 1], [], []>} : vector<8x8xbf16>, vector<8x32xbf16>, vector<8x32xf32> -> vector<8x32xf32>
    %73 = arith.addf %49, %72 : vector<8x32xf32>
    %74 = vector.extract_strided_slice %25 {offsets = [0, 16], sizes = [8, 8], strides = [1, 1]} : vector<8x32xf32> to vector<8x8xf32>
    %75 = arith.truncf %74 : vector<8x8xf32> to vector<8x8xbf16>
    %76 = vector.extract_strided_slice %18 {offsets = [0, 16], sizes = [8, 8], strides = [1, 1]} : vector<8x32xf32> to vector<8x8xf32>
    %77 = arith.truncf %76 : vector<8x8xf32> to vector<8x8xbf16>
    %78 = vector.extract_strided_slice %23 {offsets = [0, 16], sizes = [8, 8], strides = [1, 1]} : vector<8x32xf32> to vector<8x8xf32>
    %79 = arith.truncf %78 : vector<8x8xf32> to vector<8x8xbf16>
    %cst_35 = arith.constant dense<0.000000e+00> : vector<8x8xf32>
    %80 = tpu.matmul %75, %77, %cst_35 {dimension_numbers = #tpu.dot_dimension_numbers<[1], [1], [0], [0], [0, 0, 1, 0], [], []>} : vector<8x8xbf16>, vector<8x8xbf16>, vector<8x8xf32> -> vector<8x8xf32>
    %81 = arith.addf %80, %6 : vector<8x8xf32>
    %cst_36 = arith.constant dense<0xFF800000> : vector<8xf32>
    %82 = vector.multi_reduction <maximumf>, %81, %cst_36 [1] : vector<8x8xf32> to vector<8xf32>
    %83 = vector.shape_cast %82 : vector<8xf32> to vector<8x1xf32>
    %84 = vector.broadcast %83 : vector<8x1xf32> to vector<8x8xf32>
    %85 = arith.subf %81, %84 : vector<8x8xf32>
    %86 = math.exp %85 : vector<8x8xf32>
    %cst_37 = arith.constant dense<0.000000e+00> : vector<8xf32>
    %87 = vector.multi_reduction <add>, %86, %cst_37 [1] : vector<8x8xf32> to vector<8xf32>
    %88 = vector.shape_cast %87 : vector<8xf32> to vector<8x1xf32>
    %89 = tpu.reciprocal %88 {approx = true} : vector<8x1xf32> -> vector<8x1xf32>
    %90 = vector.broadcast %89 : vector<8x1xf32> to vector<8x8xf32>
    %91 = arith.mulf %86, %90 : vector<8x8xf32>
    %92 = arith.truncf %91 : vector<8x8xf32> to vector<8x8xbf16>
    %cst_38 = arith.constant dense<0.000000e+00> : vector<8x8xf32>
    %93 = tpu.matmul %92, %79, %cst_38 {dimension_numbers = #tpu.dot_dimension_numbers<[1], [0], [0], [1], [0, 0, 1, 1], [], []>} : vector<8x8xbf16>, vector<8x8xbf16>, vector<8x8xf32> -> vector<8x8xf32>
    %94 = arith.truncf %93 : vector<8x8xf32> to vector<8x8xbf16>
    %95 = vector.extract_strided_slice %26 {offsets = [16, 0], sizes = [8, 32], strides = [1, 1]} : vector<32x32xbf16> to vector<8x32xbf16>
    %cst_39 = arith.constant dense<0.000000e+00> : vector<8x32xf32>
    %96 = tpu.matmul %94, %95, %cst_39 {dimension_numbers = #tpu.dot_dimension_numbers<[1], [0], [0], [1], [0, 0, 1, 1], [], []>} : vector<8x8xbf16>, vector<8x32xbf16>, vector<8x32xf32> -> vector<8x32xf32>
    %97 = arith.addf %73, %96 : vector<8x32xf32>
    %98 = vector.extract_strided_slice %25 {offsets = [0, 24], sizes = [8, 8], strides = [1, 1]} : vector<8x32xf32> to vector<8x8xf32>
    %99 = arith.truncf %98 : vector<8x8xf32> to vector<8x8xbf16>
    %100 = vector.extract_strided_slice %18 {offsets = [0, 24], sizes = [8, 8], strides = [1, 1]} : vector<8x32xf32> to vector<8x8xf32>
    %101 = arith.truncf %100 : vector<8x8xf32> to vector<8x8xbf16>
    %102 = vector.extract_strided_slice %23 {offsets = [0, 24], sizes = [8, 8], strides = [1, 1]} : vector<8x32xf32> to vector<8x8xf32>
    %103 = arith.truncf %102 : vector<8x8xf32> to vector<8x8xbf16>
    %cst_40 = arith.constant dense<0.000000e+00> : vector<8x8xf32>
    %104 = tpu.matmul %99, %101, %cst_40 {dimension_numbers = #tpu.dot_dimension_numbers<[1], [1], [0], [0], [0, 0, 1, 0], [], []>} : vector<8x8xbf16>, vector<8x8xbf16>, vector<8x8xf32> -> vector<8x8xf32>
    %105 = arith.addf %104, %6 : vector<8x8xf32>
    %cst_41 = arith.constant dense<0xFF800000> : vector<8xf32>
    %106 = vector.multi_reduction <maximumf>, %105, %cst_41 [1] : vector<8x8xf32> to vector<8xf32>
    %107 = vector.shape_cast %106 : vector<8xf32> to vector<8x1xf32>
    %108 = vector.broadcast %107 : vector<8x1xf32> to vector<8x8xf32>
    %109 = arith.subf %105, %108 : vector<8x8xf32>
    %110 = math.exp %109 : vector<8x8xf32>
    %cst_42 = arith.constant dense<0.000000e+00> : vector<8xf32>
    %111 = vector.multi_reduction <add>, %110, %cst_42 [1] : vector<8x8xf32> to vector<8xf32>
    %112 = vector.shape_cast %111 : vector<8xf32> to vector<8x1xf32>
    %113 = tpu.reciprocal %112 {approx = true} : vector<8x1xf32> -> vector<8x1xf32>
    %114 = vector.broadcast %113 : vector<8x1xf32> to vector<8x8xf32>
    %115 = arith.mulf %110, %114 : vector<8x8xf32>
    %116 = arith.truncf %115 : vector<8x8xf32> to vector<8x8xbf16>
    %cst_43 = arith.constant dense<0.000000e+00> : vector<8x8xf32>
    %117 = tpu.matmul %116, %103, %cst_43 {dimension_numbers = #tpu.dot_dimension_numbers<[1], [0], [0], [1], [0, 0, 1, 1], [], []>} : vector<8x8xbf16>, vector<8x8xbf16>, vector<8x8xf32> -> vector<8x8xf32>
    %118 = arith.truncf %117 : vector<8x8xf32> to vector<8x8xbf16>
    %119 = vector.extract_strided_slice %26 {offsets = [24, 0], sizes = [8, 32], strides = [1, 1]} : vector<32x32xbf16> to vector<8x32xbf16>
    %cst_44 = arith.constant dense<0.000000e+00> : vector<8x32xf32>
    %120 = tpu.matmul %118, %119, %cst_44 {dimension_numbers = #tpu.dot_dimension_numbers<[1], [0], [0], [1], [0, 0, 1, 1], [], []>} : vector<8x8xbf16>, vector<8x32xbf16>, vector<8x32xf32> -> vector<8x32xf32>
    %121 = arith.addf %97, %120 : vector<8x32xf32>
    %c0_45 = arith.constant 0 : index
    %c0_46 = arith.constant 0 : index
    %122 = vector.load %arg12[%c0_45, %c0_46] : memref<1x32xf32, #tpu.memory_space<vmem>>, vector<1x32xf32>
    %123 = vector.broadcast %122 : vector<1x32xf32> to vector<8x32xf32>
    %124 = arith.addf %121, %123 : vector<8x32xf32>
    %125 = arith.addf %3, %124 : vector<8x32xf32>
    %c0_47 = arith.constant 0 : index
    %c0_48 = arith.constant 0 : index
    %126 = vector.load %arg13[%c0_47, %c0_48] : memref<1x32xf32, #tpu.memory_space<vmem>>, vector<1x32xf32>
    %c0_49 = arith.constant 0 : index
    %c0_50 = arith.constant 0 : index
    %127 = vector.load %arg14[%c0_49, %c0_50] : memref<1x32xf32, #tpu.memory_space<vmem>>, vector<1x32xf32>
    %cst_51 = arith.constant dense<0.000000e+00> : vector<8xf32>
    %128 = vector.multi_reduction <add>, %125, %cst_51 [1] : vector<8x32xf32> to vector<8xf32>
    %129 = vector.shape_cast %128 : vector<8xf32> to vector<8x1xf32>
    %130 = arith.mulf %125, %125 : vector<8x32xf32>
    %cst_52 = arith.constant dense<0.000000e+00> : vector<8xf32>
    %131 = vector.multi_reduction <add>, %130, %cst_52 [1] : vector<8x32xf32> to vector<8xf32>
    %132 = vector.shape_cast %131 : vector<8xf32> to vector<8x1xf32>
    %cst_53 = arith.constant 3.125000e-02 : f32
    %133 = vector.broadcast %cst_53 : f32 to vector<8x1xf32>
    %134 = arith.mulf %129, %133 : vector<8x1xf32>
    %cst_54 = arith.constant 3.125000e-02 : f32
    %135 = vector.broadcast %cst_54 : f32 to vector<8x1xf32>
    %136 = arith.mulf %132, %135 : vector<8x1xf32>
    %137 = arith.mulf %134, %134 : vector<8x1xf32>
    %138 = arith.subf %136, %137 : vector<8x1xf32>
    %139 = vector.broadcast %134 : vector<8x1xf32> to vector<8x32xf32>
    %140 = arith.subf %125, %139 : vector<8x32xf32>
    %cst_55 = arith.constant 9.99999997E-7 : f32
    %141 = vector.broadcast %cst_55 : f32 to vector<8x1xf32>
    %142 = arith.addf %138, %141 : vector<8x1xf32>
    %143 = math.rsqrt %142 : vector<8x1xf32>
    %144 = vector.broadcast %143 : vector<8x1xf32> to vector<8x32xf32>
    %145 = arith.mulf %140, %144 : vector<8x32xf32>
    %146 = vector.broadcast %126 : vector<1x32xf32> to vector<8x32xf32>
    %147 = arith.mulf %145, %146 : vector<8x32xf32>
    %148 = vector.broadcast %127 : vector<1x32xf32> to vector<8x32xf32>
    %149 = arith.addf %147, %148 : vector<8x32xf32>
    %150 = arith.truncf %149 : vector<8x32xf32> to vector<8x32xbf16>
    %c0_56 = arith.constant 0 : index
    %c0_57 = arith.constant 0 : index
    %151 = vector.load %arg15[%c0_56, %c0_57] : memref<32x64xbf16, #tpu.memory_space<vmem>>, vector<32x64xbf16>
    %cst_58 = arith.constant dense<0.000000e+00> : vector<8x64xf32>
    %152 = tpu.matmul %150, %151, %cst_58 {dimension_numbers = #tpu.dot_dimension_numbers<[1], [0], [0], [1], [0, 0, 1, 1], [], []>} : vector<8x32xbf16>, vector<32x64xbf16>, vector<8x64xf32> -> vector<8x64xf32>
    %c0_59 = arith.constant 0 : index
    %c0_60 = arith.constant 0 : index
    %153 = vector.load %arg16[%c0_59, %c0_60] : memref<1x64xf32, #tpu.memory_space<vmem>>, vector<1x64xf32>
    %154 = vector.broadcast %153 : vector<1x64xf32> to vector<8x64xf32>
    %155 = arith.addf %152, %154 : vector<8x64xf32>
    %cst_61 = arith.constant 0.000000e+00 : f32
    %156 = vector.broadcast %cst_61 : f32 to vector<8x64xf32>
    %157 = arith.maximumf %155, %156 : vector<8x64xf32>
    %158 = arith.truncf %157 : vector<8x64xf32> to vector<8x64xbf16>
    %c0_62 = arith.constant 0 : index
    %c0_63 = arith.constant 0 : index
    %159 = vector.load %arg17[%c0_62, %c0_63] : memref<64x32xbf16, #tpu.memory_space<vmem>>, vector<64x32xbf16>
    %cst_64 = arith.constant dense<0.000000e+00> : vector<8x32xf32>
    %160 = tpu.matmul %158, %159, %cst_64 {dimension_numbers = #tpu.dot_dimension_numbers<[1], [0], [0], [1], [0, 0, 1, 1], [], []>} : vector<8x64xbf16>, vector<64x32xbf16>, vector<8x32xf32> -> vector<8x32xf32>
    %c0_65 = arith.constant 0 : index
    %c0_66 = arith.constant 0 : index
    %161 = vector.load %arg18[%c0_65, %c0_66] : memref<1x32xf32, #tpu.memory_space<vmem>>, vector<1x32xf32>
    %162 = vector.broadcast %161 : vector<1x32xf32> to vector<8x32xf32>
    %163 = arith.addf %160, %162 : vector<8x32xf32>
    %164 = arith.addf %149, %163 : vector<8x32xf32>
    %c0_67 = arith.constant 0 : index
    %c0_68 = arith.constant 0 : index
    %165 = vector.load %arg19[%c0_67, %c0_68] : memref<1x32xf32, #tpu.memory_space<vmem>>, vector<1x32xf32>
    %c0_69 = arith.constant 0 : index
    %c0_70 = arith.constant 0 : index
    %166 = vector.load %arg20[%c0_69, %c0_70] : memref<1x32xf32, #tpu.memory_space<vmem>>, vector<1x32xf32>
    %cst_71 = arith.constant dense<0.000000e+00> : vector<8xf32>
    %167 = vector.multi_reduction <add>, %164, %cst_71 [1] : vector<8x32xf32> to vector<8xf32>
    %168 = vector.shape_cast %167 : vector<8xf32> to vector<8x1xf32>
    %169 = arith.mulf %164, %164 : vector<8x32xf32>
    %cst_72 = arith.constant dense<0.000000e+00> : vector<8xf32>
    %170 = vector.multi_reduction <add>, %169, %cst_72 [1] : vector<8x32xf32> to vector<8xf32>
    %171 = vector.shape_cast %170 : vector<8xf32> to vector<8x1xf32>
    %cst_73 = arith.constant 3.125000e-02 : f32
    %172 = vector.broadcast %cst_73 : f32 to vector<8x1xf32>
    %173 = arith.mulf %168, %172 : vector<8x1xf32>
    %cst_74 = arith.constant 3.125000e-02 : f32
    %174 = vector.broadcast %cst_74 : f32 to vector<8x1xf32>
    %175 = arith.mulf %171, %174 : vector<8x1xf32>
    %176 = arith.mulf %173, %173 : vector<8x1xf32>
    %177 = arith.subf %175, %176 : vector<8x1xf32>
    %178 = vector.broadcast %173 : vector<8x1xf32> to vector<8x32xf32>
    %179 = arith.subf %164, %178 : vector<8x32xf32>
    %cst_75 = arith.constant 9.99999997E-7 : f32
    %180 = vector.broadcast %cst_75 : f32 to vector<8x1xf32>
    %181 = arith.addf %177, %180 : vector<8x1xf32>
    %182 = math.rsqrt %181 : vector<8x1xf32>
    %183 = vector.broadcast %182 : vector<8x1xf32> to vector<8x32xf32>
    %184 = arith.mulf %179, %183 : vector<8x32xf32>
    %185 = vector.broadcast %165 : vector<1x32xf32> to vector<8x32xf32>
    %186 = arith.mulf %184, %185 : vector<8x32xf32>
    %187 = vector.broadcast %166 : vector<1x32xf32> to vector<8x32xf32>
    %188 = arith.addf %186, %187 : vector<8x32xf32>
    %c0_76 = arith.constant 0 : index
    %c0_77 = arith.constant 0 : index
    %c0_78 = arith.constant 0 : index
    %189 = vector.load %arg21[%c0_76, %c0_77, %c0_78] : memref<1x8x32xf32, #tpu.memory_space<vmem>>, vector<1x8x32xf32>
    %190 = vector.shape_cast %189 : vector<1x8x32xf32> to vector<8x32xf32>
    %191 = vector.shape_cast %188 : vector<8x32xf32> to vector<1x8x32xf32>
    tpu.vector_store %arg21[%c0_76, %c0_77, %c0_78], %191 {strides = array<i32>} : memref<1x8x32xf32, #tpu.memory_space<vmem>>, vector<1x8x32xf32>,
    return
  }
  func.func @transform_0(%arg0: i32, %arg1: i32) -> (i32, i32, i32) {
    %c0_i32 = arith.constant 0 : i32
    %c0_i32_0 = arith.constant 0 : i32
    %c0_i32_1 = arith.constant 0 : i32
    return %arg0, %c0_i32, %c0_i32_0 : i32, i32, i32
  }
  func.func @transform_1(%arg0: i32, %arg1: i32) -> (i32, i32, i32) {
    %c0_i32 = arith.constant 0 : i32
    %c0_i32_0 = arith.constant 0 : i32
    return %arg0, %arg1, %c0_i32 : i32, i32, i32
  }
  func.func @transform_2(%arg0: i32, %arg1: i32) -> (i32, i32) {
    %c0_i32 = arith.constant 0 : i32
    %c0_i32_0 = arith.constant 0 : i32
    return %arg1, %c0_i32 : i32, i32
  }
  func.func @transform_3(%arg0: i32, %arg1: i32) -> (i32, i32) {
    %c0_i32 = arith.constant 0 : i32
    %c0_i32_0 = arith.constant 0 : i32
    %c0_i32_1 = arith.constant 0 : i32
    return %c0_i32, %c0_i32_0 : i32, i32
  }
  func.func @transform_4(%arg0: i32, %arg1: i32) -> (i32, i32) {
    %c0_i32 = arith.constant 0 : i32
    %c0_i32_0 = arith.constant 0 : i32
    %c0_i32_1 = arith.constant 0 : i32
    return %c0_i32, %c0_i32_0 : i32, i32
  }
  func.func @transform_5(%arg0: i32, %arg1: i32) -> (i32, i32) {
    %c0_i32 = arith.constant 0 : i32
    %c0_i32_0 = arith.constant 0 : i32
    %c0_i32_1 = arith.constant 0 : i32
    return %c0_i32, %c0_i32_0 : i32, i32
  }
  func.func @transform_6(%arg0: i32, %arg1: i32) -> (i32, i32) {
    %c0_i32 = arith.constant 0 : i32
    %c0_i32_0 = arith.constant 0 : i32
    %c0_i32_1 = arith.constant 0 : i32
    return %c0_i32, %c0_i32_0 : i32, i32
  }
  func.func @transform_7(%arg0: i32, %arg1: i32) -> (i32, i32) {
    %c0_i32 = arith.constant 0 : i32
    %c0_i32_0 = arith.constant 0 : i32
    %c0_i32_1 = arith.constant 0 : i32
    return %c0_i32, %c0_i32_0 : i32, i32
  }
  func.func @transform_8(%arg0: i32, %arg1: i32) -> (i32, i32) {
    %c0_i32 = arith.constant 0 : i32
    %c0_i32_0 = arith.constant 0 : i32
    %c0_i32_1 = arith.constant 0 : i32
    return %c0_i32, %c0_i32_0 : i32, i32
  }
  func.func @transform_9(%arg0: i32, %arg1: i32) -> (i32, i32) {
    %c0_i32 = arith.constant 0 : i32
    %c0_i32_0 = arith.constant 0 : i32
    %c0_i32_1 = arith.constant 0 : i32
    return %c0_i32, %c0_i32_0 : i32, i32
  }
  func.func @transform_10(%arg0: i32, %arg1: i32) -> (i32, i32) {
    %c0_i32 = arith.constant 0 : i32
    %c0_i32_0 = arith.constant 0 : i32
    %c0_i32_1 = arith.constant 0 : i32
    return %c0_i32, %c0_i32_0 : i32, i32
  }
  func.func @transform_11(%arg0: i32, %arg1: i32) -> (i32, i32) {
    %c0_i32 = arith.constant 0 : i32
    %c0_i32_0 = arith.constant 0 : i32
    %c0_i32_1 = arith.constant 0 : i32
    return %c0_i32, %c0_i32_0 : i32, i32
  }
  func.func @transform_12(%arg0: i32, %arg1: i32) -> (i32, i32) {
    %c0_i32 = arith.constant 0 : i32
    %c0_i32_0 = arith.constant 0 : i32
    %c0_i32_1 = arith.constant 0 : i32
    return %c0_i32, %c0_i32_0 : i32, i32
  }
  func.func @transform_13(%arg0: i32, %arg1: i32) -> (i32, i32) {
    %c0_i32 = arith.constant 0 : i32
    %c0_i32_0 = arith.constant 0 : i32
    %c0_i32_1 = arith.constant 0 : i32
    return %c0_i32, %c0_i32_0 : i32, i32
  }
  func.func @transform_14(%arg0: i32, %arg1: i32) -> (i32, i32) {
    %c0_i32 = arith.constant 0 : i32
    %c0_i32_0 = arith.constant 0 : i32
    %c0_i32_1 = arith.constant 0 : i32
    return %c0_i32, %c0_i32_0 : i32, i32
  }
  func.func @transform_15(%arg0: i32, %arg1: i32) -> (i32, i32) {
    %c0_i32 = arith.constant 0 : i32
    %c0_i32_0 = arith.constant 0 : i32
    %c0_i32_1 = arith.constant 0 : i32
    return %c0_i32, %c0_i32_0 : i32, i32
  }
  func.func @transform_16(%arg0: i32, %arg1: i32) -> (i32, i32) {
    %c0_i32 = arith.constant 0 : i32
    %c0_i32_0 = arith.constant 0 : i32
    %c0_i32_1 = arith.constant 0 : i32
    return %c0_i32, %c0_i32_0 : i32, i32
  }
  func.func @transform_17(%arg0: i32, %arg1: i32) -> (i32, i32) {
    %c0_i32 = arith.constant 0 : i32
    %c0_i32_0 = arith.constant 0 : i32
    %c0_i32_1 = arith.constant 0 : i32
    return %c0_i32, %c0_i32_0 : i32, i32
  }
  func.func @transform_18(%arg0: i32, %arg1: i32) -> (i32, i32) {
    %c0_i32 = arith.constant 0 : i32
    %c0_i32_0 = arith.constant 0 : i32
    %c0_i32_1 = arith.constant 0 : i32
    return %c0_i32, %c0_i32_0 : i32, i32
  }
  func.func @transform_19(%arg0: i32, %arg1: i32) -> (i32, i32, i32) {
    %c0_i32 = arith.constant 0 : i32
    %c0_i32_0 = arith.constant 0 : i32
    return %arg0, %arg1, %c0_i32 : i32, i32, i32
  }
}

</mosaic_0001>

<bundles_post_ra>
// kernel: tpu_custom_call.1
= control target key start
LH: loop header
LB: loop body
LE: loop exit
PB: predicated region body
PF: predicated region fallthrough
CT: control target
= control target key end

     0   :  { %s3349_s0 = inlined_call_operand.vmem [shape: f32[2,8,32], index: 0, kind: input, shape index: {}]   ;;  %s3350_s1 = inlined_call_operand.vmem [shape: f32[2,8,32], index: 1, kind: input, shape index: {}]   ;;  %s3351_s2 = inlined_call_operand.hbm [shape: f32[8,8], index: 2, kind: input, shape index: {}]   ;;  %s3352_s3 = inlined_call_operand.vmem [shape: bf16[32,32], index: 3, kind: input, shape index: {}]   ;;  %s3353_s4 = inlined_call_operand.vmem [shape: f32[1,32], index: 4, kind: input, shape index: {}]   ;;  %s3354_s5 = inlined_call_operand.hbm [shape: bf16[32,32], index: 5, kind: input, shape index: {}]   ;;  %s3355_s6 = inlined_call_operand.hbm [shape: f32[1,32], index: 6, kind: input, shape index: {}]   ;;  %s3356_s7 = inlined_call_operand.hbm [shape: bf16[32,32], index: 7, kind: input, shape index: {}]   ;;  %s3357_s8 = inlined_call_operand.hbm [shape: f32[1,32], index: 8, kind: input, shape index: {}]   ;;  %s3358_s9 = inlined_call_operand.vmem [shape: bf16[32,32], index: 9, kind: input, shape index: {}]   ;;  %s3359_s10 = inlined_call_operand.hbm [shape: f32[1,32], index: 10, kind: input, shape index: {}]   ;;  %s3360_s11 = inlined_call_operand.hbm [shape: f32[1,32], index: 11, kind: input, shape index: {}]   ;;  %s3361_s12 = inlined_call_operand.hbm [shape: f32[1,32], index: 12, kind: input, shape index: {}]   ;;  %s3362_s13 = inlined_call_operand.vmem [shape: bf16[32,64], index: 13, kind: input, shape index: {}]   ;;  %s3363_s14 = inlined_call_operand.vmem [shape: f32[1,64], index: 14, kind: input, shape index: {}]   ;;  %s3364_s15 = inlined_call_operand.vmem [shape: bf16[64,32], index: 15, kind: input, shape index: {}]   ;;  %s3365_s16 = inlined_call_operand.vmem [shape: f32[1,32], index: 16, kind: input, shape index: {}]   ;;  %s3366_s17 = inlined_call_operand.vmem [shape: f32[1,32], index: 17, kind: input, shape index: {}]   ;;  %s3367_s18 = inlined_call_operand.vmem [shape: f32[1,32], index: 18, kind: input, shape index: {}]   ;;  %s3368_s19 = inlined_call_operand.hbm [shape: f32[2,8,32], index: 19, kind: output, shape index: {}]  }
   0x1   :  { %3386 = sst [smem:[#allocation32_spill]] %s3349_s0 }
   0x2   :  { %3387 = sst [smem:[#allocation33_spill]] %s3350_s1 }
   0x3   :  { %3388 = sst [smem:[#allocation34_spill]] %s3351_s2 }
   0x4   :  { %3389 = sst [smem:[#allocation35_spill]] %s3352_s3 }
   0x5   :  { %3390 = sst [smem:[#allocation36_spill]] %s3353_s4 }
   0x6   :  { %3391 = sst [smem:[#allocation37_spill]] %s3354_s5 }
   0x7   :  { %3392 = sst [smem:[#allocation38_spill]] %s3366_s17 }
   0x8   :  { %3393 = sst [smem:[#allocation39_spill]] %s3367_s18 }
   0x9   :  { %3394 = sst [smem:[#allocation40_spill]] %s3368_s19 }
   0xa   :  { %24 = vsyncpa [#allocation3], 0 }
   0xb   :  { %25 = vsyncpa [#allocation6], 0 }
   0xc   :  { %26 = vsyncpa [#allocation9], 0 }
   0xd   :  { %27 = vsyncpa [#allocation12], 0 }
   0xe   :  { %28 = vsyncpa [#allocation15], 0 }
   0xf   :  { %29 = vsyncpa [#allocation4], 0 }
  0x10   :  { %31 = vsyncpa [#allocation4 + $0x1], 0  ;;  %s2835_s0 = smov 0   ;;  %s2837_s30 = smov 0  }
  0x11   :  { %s2839_s20 = smov 0   ;;  %s2841_s21 = smov 0  }
  0x12   :  { %s2843_s1 = smov 0   ;;  %s2845_s22 = smov 0  }
  0x13 LB: > { %3395 = sst [smem:[#allocation23_spill]] %s2697_s0  ;;  %s1996_s2 = sadd.s32 4294967295, %s2717_s22   ;;  %s2717_s22 = sphi %s2845_s22, %s37_s22   ;;  %s2713_s1 = sphi %s2843_s1, %s3434_s1   ;;  %s2709_s21 = sphi %s2841_s21, %s3433_s21   ;;  %s2705_s20 = sphi %s2839_s20, %s3432_s20   ;;  %s2701_s30 = sphi %s2837_s30, %s3431_s30   ;;  %s2697_s0 = sphi %s2835_s0, %s3430_s0  }
  0x14   : > { %3396 = sst [smem:[#allocation24_spill]] %s2701_s30  ;;  %s1997_s23 = sadd.s32 4294967294, %s2717_s22  }
  0x15   : > { %3397 = sst [smem:[#allocation25_spill]] %s2705_s20  ;;  %s49_s24 = sadd.s32 1, %s2713_s1 }
  0x16   : > { %3398 = sst [smem:[#allocation26_spill]] %s2713_s1  ;;  %s474_s25 = sadd.s32 1, %s2705_s20 }
  0x17   : > { %3399 = sst [smem:[#allocation27_spill]] %s2717_s22  ;;  %p51_p0 = scmp.ge.s32.totalorder %s49_s24, 2 }
  0x18   : > { %p484_p1 = scmp.ne.s32.totalorder %s2705_s20, %s2701_s30  ;;  %p485_p2 = scmp.eq.s32.totalorder %s1996_s2, 1 }
  0x19   : > { %p490_p3 = scmp.ne.s32.totalorder %s2701_s30, %s2697_s0  ;;  %s3436_s24 = smov (%p51_p0, %s49_s24), 0 }
  0x1a   : > { %3400 = sst [smem:[#allocation28_spill]] %s3436_s24  ;;  %p2875_p4 = por %p485_p2, %p484_p1 }
  0x1b   : > { %p491_p5 = scmp.eq.s32.totalorder %s1997_s23, 1  ;;  %s469_s26 = ssub.s32 %s2713_s1, %s3436_s24 }
  0x1c   : > { %s3401_s3 = scalar_select %p2875_p4, 1, 0 }
  0x1d   : > { %p1998_p6 = scmp.ge.s32.totalorder %s2717_s22, 1  ;;  %p472_p7 = scmp.eq.s32.totalorder %s469_s26, 0 }
  0x1e   : > { %3402 = sst [smem:[#allocation29_spill]] %s3401_s3  ;;  %p2882_p8 = por %p491_p5, %p490_p3 }
  0x1f   : > { %p498_p9 = scmp.lt.s32.totalorder %s2717_s22, 3  ;;  %p2894_p11 = scmp.eq.s32.totalorder %s1996_s2, 0 }
  0x20   : > { %s3403_s27 = scalar_select %p2882_p8, 1, 0 }
  0x21   : > { %s2888_s28 = scalar_select %p472_p7, %s2705_s20, %s474_s25  }
  0x22   : > { %3404 = sst [smem:[#allocation30_spill]] %s3403_s27  ;;  %p2890_p10 = pnand %p1998_p6, %p498_p9 }
  0x23   : > { %3405 = sst [smem:[#allocation31_spill]] %s2888_s28  ;;  %s2719_s23 = smov [#allocation5]  }
  0x24   : > { %s3406_s29 = scalar_select %p2890_p10, 1, 0 }
  0x25   : > { %s3407_s0 = scalar_select %p2894_p11, 1, 0 }
  0x26   : > { %p2254_p12 = pneg %p2890_p10  ;;  %s529_s26 = sshll.u32 %s2719_s23, 4  ;;  %s530_s26 = int_to_ptr.vmem [resolvable:$true] %s529_s26 }
  0x27   : > { %s2720_s25 = smov [#allocation8]   ;;  %s3409_s5 = sld [smem:[#allocation37_spill]] }
  0x28   : > { %p2902_p13 = pnand %p2894_p11, %p2254_p12  ;;  %s553_s1 = sshll.u32 %s2720_s25, 4  ;;  %s2906_s1 = int_to_ptr.vmem [resolvable:$true] %s553_s1 }
  0x2a   : > { %p2916_p1 = pneg %p2902_p13 }
  0x2d   : > { %s2395_s20 = scalar_lea.hbm %s3409_s5, 256 }
  0x2e   : > { %p2396_p0 = scmp.ne.s32.totalorder %s3409_s5, %s2395_s20  ;;  %p2402_p5 = scmp.lt.u32.totalorder %s2395_s20, %s3409_s5 }
  0x30   : > { %p2398_p2 = pnand %p2916_p1, %p2396_p0 }
  0x32   : > { %p2399_p3 = pneg %p2398_p2 }
  0x34   : > { %p2404_p6 = pnand %p2402_p5, %p2399_p3 }
  0x36   : > { %2407 = shalt.err (!%p2404_p6)
}
  0x37   : > { %s2408_s28 = scalar_lea.vmem %s530_s26, 256  ;;  %p2416_p8 = scmp.lt.s32.totalorder %s530_s26, %s530_s26 }
  0x38   : > { %p2409_p7 = scmp.ne.s32.totalorder %s530_s26, %s2408_s28  ;;  %p2417_p4 = scmp.lt.s32.totalorder %s2408_s28, %s2408_s28 }
  0x3a   : > { %p2411_p9 = pnand %p2409_p7, %p2916_p1  ;;  %p2418_p11 = por %p2417_p4, %p2416_p8 }
  0x3c   : > { %p2412_p12 = pneg %p2411_p9 }
  0x3e   : > { %p2419_p10 = pnand %p2418_p11, %p2412_p12 }
  0x40   : > { %2422 = shalt.err (!%p2419_p10)
}
  0x41   : > { %s2721_s22 = smov 64   ;;  %s2722_s27 = smov 4  }
  0x42   : > { %2260 = dma.hbm_to_vmem [thread:$0]  (!%p2902_p13), %s3409_s5, 256, %s530_s26, [#allocation6], %s2721_s22, %s2721_s22, %s2722_s27  }
  0x43   : > { %s2423_s18 = scalar_lea.hbm %s3356_s7, 256 }
  0x44   : > { %p2424_p0 = scmp.ne.s32.totalorder %s3356_s7, %s2423_s18  ;;  %p2430_p10 = scmp.lt.u32.totalorder %s2423_s18, %s3356_s7 }
  0x46   : > { %p2426_p4 = pnand %p2424_p0, %p2916_p1 }
  0x48   : > { %p2427_p8 = pneg %p2426_p4 }
  0x4a   : > { %p2432_p11 = pnand %p2430_p10, %p2427_p8 }
  0x4c   : > { %2435 = shalt.err (!%p2432_p11)
}
  0x4d   : > { %s2436_s26 = scalar_lea.vmem %s2906_s1, 256  ;;  %p2444_p6 = scmp.lt.s32.totalorder %s2906_s1, %s2906_s1 }
  0x4e   : > { %p2437_p2 = scmp.ne.s32.totalorder %s2906_s1, %s2436_s26  ;;  %p2445_p7 = scmp.lt.s32.totalorder %s2436_s26, %s2436_s26 }
  0x50   : > { %p2439_p3 = pnand %p2437_p2, %p2916_p1  ;;  %p2446_p9 = por %p2445_p7, %p2444_p6 }
  0x52   : > { %p2440_p5 = pneg %p2439_p3 }
  0x54   : > { %p2447_p12 = pnand %p2446_p9, %p2440_p5 }
  0x56   : > { %2450 = shalt.err (!%p2447_p12)
}
  0x57   : > { %2266 = dma.hbm_to_vmem [thread:$0]  (!%p2902_p13), %s3356_s7, 256, %s2906_s1, [#allocation9], %s2721_s22, %s2721_s22, %s2722_s27  }
  0x58   : > { %s2723_s30 = smov [#allocation11]   ;;  %s2451_s2 = scalar_lea.hbm %s3359_s10, 16 }
  0x59   : > { %s581_s3 = sshll.u32 %s2723_s30, 4  ;;  %p2452_p0 = scmp.ne.s32.totalorder %s3359_s10, %s2451_s2  ;;  %s582_s3 = int_to_ptr.vmem [resolvable:$true] %s581_s3 }
  0x5a   : > { %p2458_p10 = scmp.lt.u32.totalorder %s2451_s2, %s3359_s10 }
  0x5b   : > { %p2454_p4 = pnand %p2452_p0, %p2916_p1 }
  0x5d   : > { %p2455_p8 = pneg %p2454_p4 }
  0x5f   : > { %p2460_p11 = pnand %p2458_p10, %p2455_p8 }
  0x61   : > { %2463 = shalt.err (!%p2460_p11)
}
  0x62   : > { %s2464_s1 = scalar_lea.vmem %s582_s3, 16  ;;  %s2471_s22 = scalar_lea.vmem %s582_s3, 32 }
  0x63   : > { %p2465_p2 = scmp.ne.s32.totalorder %s582_s3, %s2464_s1  ;;  %p2472_p6 = scmp.lt.s32.totalorder %s582_s3, %s582_s3 }
  0x64   : > { %p2473_p7 = scmp.lt.s32.totalorder %s2471_s22, %s2464_s1 }
  0x65   : > { %p2467_p3 = pnand %p2465_p2, %p2916_p1 }
  0x66   : > { %p2474_p9 = por %p2473_p7, %p2472_p6 }
  0x67   : > { %p2468_p5 = pneg %p2467_p3 }
  0x69   : > { %p2475_p12 = pnand %p2474_p9, %p2468_p5 }
  0x6b   : > { %2478 = shalt.err (!%p2475_p12)
}
  0x6c   : > { %2272 = dma.hbm_to_vmem [thread:$0]  (!%p2902_p13), %s3359_s10, 16, %s582_s3, [#allocation12]  }
  0x6d   : > { %s2724_s5 = smov [#allocation2]   ;;  %s2725_s30 = smov [#allocation7]  }
  0x6e   : > { %s513_s18 = sshll.u32 %s2724_s5, 4  ;;  %s543_s19 = sshll.u32 %s2725_s30, 4  ;;  %s514_s18 = int_to_ptr.vmem [resolvable:$true] %s513_s18  ;;  %s2973_s19 = int_to_ptr.vmem [resolvable:$true] %s543_s19 }
  0x6f   : > { %s3411_s25 = sld [smem:[#allocation34_spill]] }
  0x75   : > { %s2479_s28 = scalar_lea.hbm %s3411_s25, 128 }
  0x76   : > { %p2480_p0 = scmp.ne.s32.totalorder %s3411_s25, %s2479_s28  ;;  %p2486_p10 = scmp.lt.u32.totalorder %s2479_s28, %s3411_s25 }
  0x78   : > { %p2482_p4 = pnand %p2480_p0, %p2916_p1 }
  0x7a   : > { %p2483_p8 = pneg %p2482_p4 }
  0x7c   : > { %p2488_p11 = pnand %p2486_p10, %p2483_p8 }
  0x7e   : > { %2491 = shalt.err (!%p2488_p11)
}
  0x7f   : > { %s2492_s27 = scalar_lea.vmem %s514_s18, 128  ;;  %p2500_p6 = scmp.lt.s32.totalorder %s514_s18, %s514_s18 }
  0x80   : > { %p2493_p2 = scmp.ne.s32.totalorder %s514_s18, %s2492_s27  ;;  %p2501_p7 = scmp.lt.s32.totalorder %s2492_s27, %s2492_s27 }
  0x82   : > { %p2495_p3 = pnand %p2493_p2, %p2916_p1  ;;  %p2502_p9 = por %p2501_p7, %p2500_p6 }
  0x84   : > { %p2496_p5 = pneg %p2495_p3 }
  0x86   : > { %p2503_p12 = pnand %p2502_p9, %p2496_p5 }
  0x88   : > { %2506 = shalt.err (!%p2503_p12)
}
  0x89   : > { %2257 = dma.hbm_to_vmem [thread:$0]  (!%p2902_p13), %s3411_s25, 128, %s514_s18, [#allocation3]  }
  0x8a   : > { %s2507_s2 = scalar_lea.hbm %s3355_s6, 16 }
  0x8b   : > { %p2508_p0 = scmp.ne.s32.totalorder %s3355_s6, %s2507_s2  ;;  %p2514_p10 = scmp.lt.u32.totalorder %s2507_s2, %s3355_s6 }
  0x8d   : > { %p2510_p4 = pnand %p2508_p0, %p2916_p1 }
  0x8f   : > { %p2511_p8 = pneg %p2510_p4 }
  0x91   : > { %p2516_p11 = pnand %p2514_p10, %p2511_p8 }
  0x93   : > { %2519 = shalt.err (!%p2516_p11)
}
  0x94   : > { %s2520_s18 = scalar_lea.vmem %s2973_s19, 16  ;;  %s2527_s3 = scalar_lea.vmem %s2973_s19, 32 }
  0x95   : > { %p2521_p2 = scmp.ne.s32.totalorder %s2973_s19, %s2520_s18  ;;  %p2528_p6 = scmp.lt.s32.totalorder %s2973_s19, %s2973_s19 }
  0x96   : > { %p2529_p7 = scmp.lt.s32.totalorder %s2527_s3, %s2520_s18 }
  0x97   : > { %p2523_p3 = pnand %p2521_p2, %p2916_p1 }
  0x98   : > { %p2530_p9 = por %p2529_p7, %p2528_p6 }
  0x99   : > { %p2524_p5 = pneg %p2523_p3 }
  0x9b   : > { %p2531_p12 = pnand %p2530_p9, %p2524_p5 }
  0x9d   : > { %2534 = shalt.err (!%p2531_p12)
}
  0x9e   : > { %2263 = dma.hbm_to_vmem [thread:$0]  (!%p2902_p13), %s3355_s6, 16, %s2973_s19, [#allocation6]  }
  0x9f   : > { %s2726_s5 = smov [#allocation10]   ;;  %s2727_s20 = smov [#allocation13]  }
  0xa0   : > { %s567_s30 = sshll.u32 %s2726_s5, 4  ;;  %s592_s2 = sshll.u32 %s2727_s20, 4  ;;  %s568_s30 = int_to_ptr.vmem [resolvable:$true] %s567_s30  ;;  %s3017_s2 = int_to_ptr.vmem [resolvable:$true] %s592_s2 }
  0xa1   : > { %s2535_s1 = scalar_lea.hbm %s3357_s8, 16 }
  0xa2   : > { %p2536_p0 = scmp.ne.s32.totalorder %s3357_s8, %s2535_s1  ;;  %p2542_p10 = scmp.lt.u32.totalorder %s2535_s1, %s3357_s8 }
  0xa4   : > { %p2538_p4 = pnand %p2536_p0, %p2916_p1 }
  0xa6   : > { %p2539_p8 = pneg %p2538_p4 }
  0xa8   : > { %p2544_p11 = pnand %p2542_p10, %p2539_p8 }
  0xaa   : > { %2547 = shalt.err (!%p2544_p11)
}
  0xab   : > { %s2548_s27 = scalar_lea.vmem %s568_s30, 16  ;;  %s2555_s17 = scalar_lea.vmem %s568_s30, 32 }
  0xac   : > { %p2549_p2 = scmp.ne.s32.totalorder %s568_s30, %s2548_s27  ;;  %p2556_p6 = scmp.lt.s32.totalorder %s568_s30, %s568_s30 }
  0xad   : > { %p2557_p7 = scmp.lt.s32.totalorder %s2555_s17, %s2548_s27 }
  0xae   : > { %p2551_p3 = pnand %p2549_p2, %p2916_p1 }
  0xaf   : > { %p2558_p9 = por %p2557_p7, %p2556_p6 }
  0xb0   : > { %p2552_p5 = pneg %p2551_p3 }
  0xb2   : > { %p2559_p12 = pnand %p2558_p9, %p2552_p5 }
  0xb4   : > { %2562 = shalt.err (!%p2559_p12)
}
  0xb5   : > { %2269 = dma.hbm_to_vmem [thread:$0]  (!%p2902_p13), %s3357_s8, 16, %s568_s30, [#allocation9]  }
  0xb6   : > { %s2563_s1 = scalar_lea.hbm %s3360_s11, 16 }
  0xb7   : > { %p2564_p0 = scmp.ne.s32.totalorder %s3360_s11, %s2563_s1  ;;  %p2570_p10 = scmp.lt.u32.totalorder %s2563_s1, %s3360_s11 }
  0xb9   : > { %p2566_p4 = pnand %p2564_p0, %p2916_p1 }
  0xbb   : > { %p2567_p8 = pneg %p2566_p4 }
  0xbd   : > { %p2572_p11 = pnand %p2570_p10, %p2567_p8 }
  0xbf   : > { %2575 = shalt.err (!%p2572_p11)
}
  0xc0   : > { %s2576_s30 = scalar_lea.vmem %s3017_s2, 16  ;;  %s2583_s27 = scalar_lea.vmem %s3017_s2, 32 }
  0xc1   : > { %p2577_p2 = scmp.ne.s32.totalorder %s3017_s2, %s2576_s30  ;;  %p2584_p6 = scmp.lt.s32.totalorder %s3017_s2, %s3017_s2 }
  0xc2   : > { %p2585_p7 = scmp.lt.s32.totalorder %s2583_s27, %s2576_s30 }
  0xc3   : > { %p2579_p3 = pnand %p2577_p2, %p2916_p1 }
  0xc4   : > { %p2586_p9 = por %p2585_p7, %p2584_p6 }
  0xc5   : > { %p2580_p5 = pneg %p2579_p3 }
  0xc7   : > { %p2587_p12 = pnand %p2586_p9, %p2580_p5 }
  0xc9   : > { %2590 = shalt.err (!%p2587_p12)
}
  0xca   : > { %2275 = dma.hbm_to_vmem [thread:$0]  (!%p2902_p13), %s3360_s11, 16, %s3017_s2, [#allocation12]  }
  0xcb   : > { %s2728_s20 = smov [#allocation14]   ;;  %s2591_s22 = scalar_lea.hbm %s3361_s12, 16 }
  0xcc   : > { %s603_s28 = sshll.u32 %s2728_s20, 4  ;;  %p2592_p0 = scmp.ne.s32.totalorder %s3361_s12, %s2591_s22  ;;  %s604_s28 = int_to_ptr.vmem [resolvable:$true] %s603_s28 }
  0xcd   : > { %p2598_p10 = scmp.lt.u32.totalorder %s2591_s22, %s3361_s12 }
  0xce   : > { %p2594_p4 = pnand %p2592_p0, %p2916_p1 }
  0xd0   : > { %p2595_p8 = pneg %p2594_p4 }
  0xd2   : > { %p2600_p11 = pnand %p2598_p10, %p2595_p8 }
  0xd4   : > { %2603 = shalt.err (!%p2600_p11)
}
  0xd5   : > { %s2604_s2 = scalar_lea.vmem %s604_s28, 16  ;;  %s2611_s27 = scalar_lea.vmem %s604_s28, 32 }
  0xd6   : > { %p2605_p2 = scmp.ne.s32.totalorder %s604_s28, %s2604_s2  ;;  %p2612_p6 = scmp.lt.s32.totalorder %s604_s28, %s604_s28 }
  0xd7   : > { %p2613_p7 = scmp.lt.s32.totalorder %s2611_s27, %s2604_s2 }
  0xd8   : > { %p2607_p3 = pnand %p2605_p2, %p2916_p1 }
  0xd9   : > { %p2614_p9 = por %p2613_p7, %p2612_p6 }
  0xda   : > { %p2608_p5 = pneg %p2607_p3 }
  0xdc   : > { %p2615_p12 = pnand %p2614_p9, %p2608_p5 }
  0xde   : > { %2618 = shalt.err (!%p2615_p12)
}
  0xdf   : > { %2278 = dma.hbm_to_vmem [thread:$0]  (!%p2902_p13), %s3361_s12, 16, %s604_s28, [#allocation15]  }
  0xe0   : > { %p3412_p0 = scmp.ne.s32.totalorder %s3406_s29, 0 }
  0xe1   : > { %p3413_p4 = scmp.ne.s32.totalorder (!%p3412_p0), %s3407_s0, 0 }
  0xe2   : > { %651 = sbr.rel (%p3412_p0) target bundleno = 3644 (0xe3c), region = 96 }
  0xe9   : > { %2672 = dma.done.wait (%p3413_p4), [#allocation3], 128  }
  0xea   : > { %2674 = vsyncadd (%p3413_p4), [#allocation3], 4294967168 }
  0xeb   : > { %2676 = dma.done.wait (%p3413_p4), [#allocation6], 272  }
  0xec   : > { %2678 = vsyncadd (%p3413_p4), [#allocation6], 4294967024 }
  0xed   : > { %2680 = dma.done.wait (%p3413_p4), [#allocation9], 272  }
  0xee   : > { %2682 = vsyncadd (%p3413_p4), [#allocation9], 4294967024 }
  0xef   : > { %2684 = dma.done.wait (%p3413_p4), [#allocation12], 32  }
  0xf0   : > { %2686 = vsyncadd (%p3413_p4), [#allocation12], 4294967264 }
  0xf1   : > { %2688 = dma.done.wait (%p3413_p4), [#allocation15], 16  }
  0xf2   : > { %2690 = vsyncadd (%p3413_p4), [#allocation15], 4294967280  ;;  %p741_p13 = scmp.lt.s32.totalorder %s2709_s21, 1  ;;  %v2729_v0 = vmov 0.0   ;;  %vm2730_vm0 = vmmov 0   ;;  %s3414_s20 = sld [smem:[#allocation33_spill]] }
  0xf3   : > { %2104 = vmatprep.subr.bf16.mxu1 %v2729_v0  ;;  %2108 = vmatprep.mubr.msk.bf16.mxu1 %vm2730_vm0, %v2729_v0  ;;  %s3415_s22 = sld [smem:[#allocation35_spill]]  ;;  %vm782_vm1 = vcmask 261120   ;;  %v2365_v4 = vld [vmem:[#allocation5] sm:$0xff]   ;;  %s3417_s27 = sld [smem:[#allocation32_spill]]  ;;  %v2366_v6 = vld [vmem:[#allocation5 + $0x8] sm:$0xff]   ;;  %vm963_vm2 = vcmask 64512  }
  0xf4   : > { %s742_s24 = scalar_select %p741_p13, %s2709_s21, 1  ;;  %2120 = vmatprep.subr.bf16.mxu0 %v2729_v0  ;;  %2124 = vmatprep.mubr.msk.bf16.mxu0 %vm2730_vm0, %v2729_v0  ;;  %v2024_v14 = vld [vmem:[#allocation7] ss:$0 sm:$0xff]  ;;  %v2367_v25 = vld [vmem:[#allocation8] sm:$0xff]   ;;  %v2368_v26 = vld [vmem:[#allocation8 + $0x8] sm:$0xff]   ;;  %vm1025_vm3 = vcmask 1043456  }
  0xf5   : > { %s3418_s4 = sld [smem:[#allocation36_spill]]  ;;  %2121 = vmatpush3.bf16.msra.mxu0 %v2367_v25  ;;  %v755_v30 = vld [vmem:[#allocation2] sm:$0xff]  ;;  %v2028_v53 = vld [vmem:[#allocation10] ss:$0 sm:$0xff]  ;;  %s2732_s23 = smov 112   ;;  %vm1740_vm4 = vcmask 523264  }
  0xf6   : > { %s2018_s29 = sshll.u32 %s742_s24, 3  ;;  %2122 = vmatprep.subr.bf16.mxu0 %v2729_v0  ;;  %v3163_v31 = vmul.f32 -1e+09, %v755_v30  ;;  %s2733_s1 = smov 104  }
  0xf7   : > { %s3419_s2 = sld [smem:[#allocation24_spill]]  ;;  %s3420_s5 = sld [smem:[#allocation29_spill]] }
  0xf8   : > { %s751_s28 = scalar_lea.vmem %s3414_s20, %s2018_s29  ;;  %s2060_s26 = sshll.u32 %s2709_s21, 7 }
  0xf9   : > { %s3416_s18 = smov %s3415_s22  ;;  %v2363_v1 = vld [vmem:[%s3415_s22] sm:$0xff]   ;;  %s744_s17 = scalar_lea.vmem %s3417_s27, %s2018_s29  ;;  %2123 = vmatpush3.bf16.msra.mxu0 %v2368_v26 }
  0xfa   : > { %v2364_v2 = vld [vmem:[%s3416_s18 + $0x8] sm:$0xff]   ;;  %2105 = vmatpush3.bf16.msra.mxu1 %v2363_v1  ;;  %v3118_v3 = vld [vmem:[%s751_s28] sm:$0xff]  ;;  %s2731_s29 = smov 120   ;;  %2134 = vmatprep.subr.bf16.mxu0 %v2729_v0  ;;  %s3422_s28 = sld [smem:[#allocation39_spill]] }
  0xfb   : > { %2106 = vmatprep.subr.bf16.mxu1 %v2729_v0  ;;  %v758_v5 = vpack.c.bf16 %v3118_v3, %v3118_v3  ;;  %v753_v7 = vld [vmem:[%s744_s17] sm:$0xff]  ;;  %s3423_s30 = sld [smem:[#allocation40_spill]]  ;;  %s2734_s21 = smov [#allocation16]  }
  0xfc   : > { %v757_v8 = vpack.c.bf16 %v753_v7, %v753_v7  ;;  %v2020_v13 = vld [vmem:[%s3418_s4] ss:$0 sm:$0xff] }
  0xfd   : > { %s738_s27 = sand.u32 1, %s3419_s2   ;;  %p3425_p8 = scmp.ne.s32.totalorder %s3420_s5, 0 }
  0xfe   : > { %2107 = vmatpush3.bf16.msra.mxu1 %v2364_v2  ;;  %2125 = vmatmul.mubr.msk.bf16.vlgmr.msra.gmra.mrb[0].mxu0 %vm782_vm1, %v757_v8  ;;  %s2017_s17 = sshll.u32 %s738_s27, 3  ;;  %s1818_s24 = scalar_lea.sflag [#allocation4], %s738_s27 }
  0xff   : > { %2112 = vmatprep.subr.bf16.mxu1 %v2729_v0  ;;  %2136 = vmatprep.mubr.msk.bf16.mxu0 %vm2730_vm0, %v2729_v0 }
 0x101   : > { %2109 = vmatmul.mubr.msk.bf16.vlgmr.msra.gmra.mrb[0].mxu1 %vm782_vm1, %v758_v5  ;;  %s3424_s2 = smov %s3423_s30  ;;  %s3301_s4 = scalar_lea.hbm %s3423_s30, %s2060_s26 }
 0x102   : > { %2113 = vmatpush3.bf16.msra.mxu1 %v2365_v4  ;;  %2116 = vmatprep.mubr.msk.bf16.mxu1 %vm2730_vm0, %v2729_v0  ;;  %v957_v4 = vld [vmem:[%s3358_s9 + $0x4] sm:$0xf] }
 0x103   : > { %2114 = vmatprep.subr.bf16.mxu1 %v2729_v0  ;;  %v1188_v5 = vsel %vm1025_vm3, %v957_v4, 0 }
 0x106   : > { %2115 = vmatpush3.bf16.msra.mxu1 %v2366_v6 }
 0x107   : > { %2128 = vmatprep.subr.bf16.mxu1 %v2729_v0 }
 0x109   : > { %2117 = vmatmul.mubr.msk.bf16.vlgmr.msra.gmra.mrb[4].mxu1 %vm782_vm1, %v757_v8 }
 0x10a   : > { %2130 = vmatprep.mubr.msk.bf16.mxu1 %vm2730_vm0, %v2729_v0 }
 0x1d1   : > { %v949_v47 = vpop.f32.mrb[0].mxu0 }
 0x1d2   : > { %v2126_v48 = vpop.f32.mrb[1].mxu0  ;;  %v950_v54 = vadd.f32 %v2028_v53, %v949_v47 }
 0x1d3   : > { %v952_v49 = vpop.f32.mrb[2].mxu0 }
 0x1d4   : > { %v820_v9 = vpop.f32.mrb[0].mxu1  ;;  %v2127_v50 = vpop.f32.mrb[3].mxu0  ;;  %v3170_v55 = vpack.c.bf16 %v950_v54, %v950_v54 }
 0x1d5   : > { %v2110_v10 = vpop.f32.mrb[1].mxu1  ;;  %v821_v15 = vadd.f32 %v2020_v13, %v820_v9 }
 0x1d6   : > { %v823_v11 = vpop.f32.mrb[2].mxu1  ;;  %v1027_v56 = vsel %vm1025_vm3, %v3170_v55, 0  ;;  %v956_v10 = vld [vmem:[%s3358_s9] sm:$0xf] }
 0x1d7   : > { %v2111_v12 = vpop.f32.mrb[3].mxu1  ;;  %v955_v20 = vmul.f32 0.35355338, %v821_v15  ;;  %2135 = vmatpush3.bf16.msra.mxu0 %v1027_v56  ;;  %v1234_v13 = vsel %vm1025_vm3, %v956_v10, 0 }
 0x1d8   : > { %2146 = vmatprep.subr.bf16.mxu0 %v2729_v0 }
 0x1d9   : > { %v3144_v24 = vpack.c.bf16 %v955_v20, %v955_v20 }
 0x1dc   : > { %v886_v16 = vpop.f32.mrb[4].mxu1 }
 0x1dd   : > { %v887_v17 = vadd.f32 %v2024_v14, %v886_v16  ;;  %v2118_v18 = vpop.f32.mrb[5].mxu1 }
 0x1de   : > { %v889_v19 = vpop.f32.mrb[6].mxu1 }
 0x1df   : > { %v3138_v21 = vpack.c.bf16 %v887_v17, %v887_v17  ;;  %v2119_v22 = vpop.f32.mrb[7].mxu1 }
 0x1e1   : > { %1074 = vrot.lane.b32.xlu0 %v3138_v21, %s2731_s29  ;;  %v968_v23 = vsel %vm963_vm2, %v3138_v21, 0 }
 0x1e2   : > { %2129 = vmatpush3.bf16.xpose.msra.mxu1 %v968_v23 }
 0x1e3   : > { %2140 = vmatprep.subr.bf16.mxu1 %v2729_v0 }
 0x1e5   : > { %1071 = vrot.lane.b32.xlu0 %v3144_v24, %s2731_s29 }
 0x1e9   : > { %2131 = vmatmul.mubr.msk.bf16.vlgmr.msra.gmra.mrb[8].mxu1 %vm963_vm2, %v3144_v24 }
 0x1ea   : > { %2142 = vmatprep.mubr.msk.bf16.mxu1 %vm2730_vm0, %v2729_v0 }
 0x253   : > { %v1075_v27 = vpop.permute.xlu0 %1074 }
 0x254   : > { %v1080_v28 = vsel %vm963_vm2, %v1075_v27, 0 }
 0x255   : > { %2141 = vmatpush3.bf16.xpose.msra.mxu1 %v1080_v28 }
 0x256   : > { %2152 = vmatprep.subr.bf16.mxu1 %v2729_v0 }
 0x257   : > { %v1072_v29 = vpop.permute.xlu0 %1071 }
 0x25c   : > { %2143 = vmatmul.mubr.msk.bf16.vlgmr.msra.gmra.mrb[12].mxu1 %vm963_vm2, %v1072_v29 }
 0x25d   : > { %2154 = vmatprep.mubr.msk.bf16.mxu1 %vm2730_vm0, %v2729_v0  ;;  %2153 = vmatpush3.bf16.msra.mxu1 %v1188_v5 }
 0x25e   : > { %2164 = vmatprep.subr.bf16.mxu1 %v2729_v0 }
 0x2bc   : > { %v1004_v32 = vpop.f32.mrb[8].mxu1 }
 0x2bd   : > { %v1005_v33 = vadd.f32 %v1004_v32, %v3163_v31  ;;  %v2132_v34 = vpop.f32.mrb[9].mxu1 }
 0x2be   : > { %v1007_v35 = vpop.f32.mrb[10].mxu1 }
 0x2bf   : > { %v2133_v36 = vpop.f32.mrb[11].mxu1  ;;  %v1010_v37 = vsel %vm963_vm2, %v1005_v33, -inf }
 0x2c0   : > { %1011 = vmax.xlane.f32.xlu1 %v1010_v37 }
 0x32f   : > { %v1116_v38 = vpop.f32.mrb[12].mxu1 }
 0x330   : > { %v1117_v39 = vadd.f32 %v1116_v38, %v3163_v31  ;;  %v2144_v40 = vpop.f32.mrb[13].mxu1 }
 0x331   : > { %v1119_v41 = vpop.f32.mrb[14].mxu1 }
 0x332   : > { %v2145_v42 = vpop.f32.mrb[15].mxu1  ;;  %v1122_v43 = vsel %vm963_vm2, %v1117_v39, -inf }
 0x333   : > { %1123 = vmax.xlane.f32.xlu1 %v1122_v43 }
 0x34d   : > { %v1012_v44 = vpop.xlane.xlu1 %1011 }
 0x34e   : > { %v1013_v45 = vsub.f32 %v1005_v33, %v1012_v44 }
 0x350   : > { %v1014_v46 = vmul.f32 1.442695, %v1013_v45 }
 0x352   : > { %2375 = vpow2.f32 %v1014_v46 }
 0x35c   : > { %v2376_v51 = vpop.eup %2375 }
 0x35d   : > { %v1016_v52 = vsel %vm963_vm2, %v2376_v51, 0.0 }
 0x35e   : > { %1017 = vadd.xlane.f32.xlu0 %v1016_v52 }
 0x374   : > { %1338 = vrot.lane.b32.xlu0 %v3170_v55, %s2732_s23 }
 0x3c0   : > { %v1124_v57 = vpop.xlane.xlu1 %1123 }
 0x3c1   : > { %v1125_v58 = vsub.f32 %v1117_v39, %v1124_v57 }
 0x3c3   : > { %v1126_v59 = vmul.f32 1.442695, %v1125_v58 }
 0x3c5   : > { %2377 = vpow2.f32 %v1126_v59 }
 0x3cf   : > { %v2378_v60 = vpop.eup %2377 }
 0x3d0   : > { %v1128_v61 = vsel %vm963_vm2, %v2378_v60, 0.0 }
 0x3d1   : > { %1129 = vadd.xlane.f32.xlu1 %v1128_v61 }
 0x3e2   : > { %1135 = vrot.lane.b32.xlu1 %v3170_v55, %s2731_s29 }
 0x3e6   : > { %1278 = vrot.lane.b32.xlu1 %v3138_v21, %s2732_s23 }
 0x3ea   : > { %1276 = vrot.lane.b32.xlu1 %v3144_v24, %s2732_s23  ;;  %s3421_s23 = sld [smem:[#allocation38_spill]] }
 0x3eb   : > { %v1018_v62 = vpop.xlane.xlu0 %1017 }
 0x3ec   : > { %2379 = vrcp.f32 %v1018_v62 }
 0x3ef   : > { %v1339_v14 = vpop.permute.xlu0 %1338 }
 0x3f0   : > { %v1344_v19 = vsel %vm1025_vm3, %v1339_v14, 0 }
 0x3f6   : > { %v2380_v63 = vpop.eup %2379 }
 0x3f7   : > { %v1020_v1 = vmul.f32 %v2380_v63, %v2376_v51 }
 0x3f9   : > { %v1021_v2 = vpack.c.bf16 %v1020_v1, %v1020_v1 }
 0x3fb   : > { %2137 = vmatmul.mubr.msk.bf16.vlgmr.msra.gmra.mrb[4].mxu0 %vm963_vm2, %v1021_v2 }
 0x3fc   : > { %2148 = vmatprep.mubr.msk.bf16.mxu0 %vm2730_vm0, %v2729_v0 }
 0x45e   : > { %v1130_v6 = vpop.xlane.xlu1 %1129 }
 0x45f   : > { %2381 = vrcp.f32 %v1130_v6 }
 0x462   : > { %v1136_v7 = vpop.permute.xlu1 %1135 }
 0x463   : > { %v1141_v8 = vsel %vm1025_vm3, %v1136_v7, 0 }
 0x464   : > { %2147 = vmatpush3.bf16.msra.mxu0 %v1141_v8 }
 0x465   : > { %2158 = vmatprep.subr.bf16.mxu0 %v2729_v0 }
 0x466   : > { %v1279_v22 = vpop.permute.xlu1 %1278 }
 0x467   : > { %v1284_v28 = vsel %vm963_vm2, %v1279_v22, 0 }
 0x469   : > { %v2382_v9 = vpop.eup %2381 }
 0x46a   : > { %v1132_v11 = vmul.f32 %v2382_v9, %v2378_v60  ;;  %v1277_v30 = vpop.permute.xlu1 %1276 }
 0x46c   : > { %v1133_v12 = vpack.c.bf16 %v1132_v11, %v1132_v11 }
 0x46e   : > { %2149 = vmatmul.mubr.msk.bf16.vlgmr.msra.gmra.mrb[8].mxu0 %vm963_vm2, %v1133_v12 }
 0x46f   : > { %2159 = vmatpush3.bf16.msra.mxu0 %v1234_v13  ;;  %2160 = vmatprep.mubr.msk.bf16.mxu0 %vm2730_vm0, %v2729_v0 }
 0x470   : > { %2170 = vmatprep.subr.bf16.mxu0 %v2729_v0 }
 0x4ce   : > { %v1063_v15 = vpop.f32.mrb[4].mxu0 }
 0x4cf   : > { %v1069_v16 = vpack.c.bf16 %v1063_v15, %v1063_v15  ;;  %v2138_v17 = vpop.f32.mrb[5].mxu0 }
 0x4d0   : > { %v1066_v18 = vpop.f32.mrb[6].mxu0 }
 0x4d1   : > { %v2139_v20 = vpop.f32.mrb[7].mxu0  ;;  %2161 = vmatmul.mubr.msk.bf16.vlgmr.msra.gmra.mrb[12].mxu0 %vm963_vm2, %v1069_v16 }
 0x4d2   : > { %2171 = vmatpush3.bf16.msra.mxu0 %v1344_v19  ;;  %2172 = vmatprep.mubr.msk.bf16.mxu0 %vm2730_vm0, %v2729_v0 }
 0x4d3   : > { %2182 = vmatprep.subr.bf16.mxu0 %v2729_v0 }
 0x541   : > { %v1177_v23 = vpop.f32.mrb[8].mxu0 }
 0x542   : > { %v1183_v25 = vpack.c.bf16 %v1177_v23, %v1177_v23  ;;  %v2150_v26 = vpop.f32.mrb[9].mxu0 }
 0x543   : > { %v1180_v27 = vpop.f32.mrb[10].mxu0 }
 0x544   : > { %v2151_v29 = vpop.f32.mrb[11].mxu0  ;;  %2155 = vmatmul.mubr.msk.bf16.vlgmr.msra.gmra.mrb[16].mxu1 %vm963_vm2, %v1183_v25 }
 0x545   : > { %2165 = vmatpush3.bf16.xpose.msra.mxu1 %v1284_v28  ;;  %2166 = vmatprep.mubr.msk.bf16.mxu1 %vm2730_vm0, %v2729_v0 }
 0x546   : > { %2176 = vmatprep.subr.bf16.mxu1 %v2729_v0 }
 0x54c   : > { %2167 = vmatmul.mubr.msk.bf16.vlgmr.msra.gmra.mrb[20].mxu1 %vm963_vm2, %v1277_v30 }
 0x54d   : > { %2178 = vmatprep.mubr.msk.bf16.mxu1 %vm2730_vm0, %v2729_v0 }
 0x5a4   : > { %v1270_v32 = vpop.f32.mrb[12].mxu0 }
 0x5a5   : > { %v2162_v33 = vpop.f32.mrb[13].mxu0 }
 0x5a6   : > { %v1273_v34 = vpop.f32.mrb[14].mxu0 }
 0x5a7   : > { %v2163_v35 = vpop.f32.mrb[15].mxu0  ;;  %v2044_v34 = vld [vmem:[#allocation11] ss:$0 sm:$0xff] }
 0x617   : > { %v1224_v36 = vpop.f32.mrb[16].mxu1 }
 0x618   : > { %v3212_v37 = vadd.f32 %v1270_v32, %v1224_v36  ;;  %v2156_v38 = vpop.f32.mrb[17].mxu1 }
 0x619   : > { %v1227_v39 = vpop.f32.mrb[18].mxu1 }
 0x61a   : > { %v2157_v40 = vpop.f32.mrb[19].mxu1 }
 0x61f   : > { %v1320_v41 = vpop.f32.mrb[20].mxu1 }
 0x620   : > { %v1321_v42 = vadd.f32 %v1320_v41, %v3163_v31  ;;  %v2168_v43 = vpop.f32.mrb[21].mxu1 }
 0x621   : > { %v1323_v44 = vpop.f32.mrb[22].mxu1 }
 0x622   : > { %v2169_v45 = vpop.f32.mrb[23].mxu1  ;;  %v1326_v46 = vsel %vm963_vm2, %v1321_v42, -inf  ;;  %v2369_v44 = vld [vmem:[%s3362_s13] sm:$0xff]  }
 0x623   : > { %1327 = vmax.xlane.f32.xlu1 %v1326_v46  ;;  %v2370_v45 = vld [vmem:[%s3362_s13 + $0x8] sm:$0xff]  }
 0x624   : > { %v2372_v46 = vld [vmem:[%s3364_s15 + $0x8] sm:$0xff]  }
 0x6b0   : > { %v1328_v47 = vpop.xlane.xlu1 %1327 }
 0x6b1   : > { %v1329_v48 = vsub.f32 %v1321_v42, %v1328_v47 }
 0x6b3   : > { %v1330_v49 = vmul.f32 1.442695, %v1329_v48 }
 0x6b5   : > { %2383 = vpow2.f32 %v1330_v49 }
 0x6bf   : > { %v2384_v50 = vpop.eup %2383 }
 0x6c0   : > { %v1332_v51 = vsel %vm963_vm2, %v2384_v50, 0.0 }
 0x6c1   : > { %1333 = vadd.xlane.f32.xlu0 %v1332_v51 }
 0x6d7   : > { %1436 = vrot.lane.b32.xlu0 %v3138_v21, %s2733_s1 }
 0x6db   : > { %1434 = vrot.lane.b32.xlu0 %v3144_v24, %s2733_s1  ;;  %v958_v24 = vld [vmem:[%s3358_s9 + $0x8] sm:$0xf] }
 0x6dc   : > { %v1391_v59 = vsel %vm1025_vm3, %v958_v24, 0 }
 0x6dd   : > { %2177 = vmatpush3.bf16.msra.mxu1 %v1391_v59 }
 0x6de   : > { %2188 = vmatprep.subr.bf16.mxu1 %v2729_v0 }
 0x74e   : > { %v1334_v52 = vpop.xlane.xlu0 %1333 }
 0x74f   : > { %2385 = vrcp.f32 %v1334_v52 }
 0x752   : > { %v1437_v56 = vpop.permute.xlu0 %1436 }
 0x753   : > { %v1442_v58 = vsel %vm963_vm2, %v1437_v56, 0 }
 0x756   : > { %v1435_v21 = vpop.permute.xlu0 %1434 }
 0x759   : > { %v2386_v53 = vpop.eup %2385 }
 0x75a   : > { %v1336_v54 = vmul.f32 %v2386_v53, %v2384_v50 }
 0x75c   : > { %v1337_v57 = vpack.c.bf16 %v1336_v54, %v1336_v54 }
 0x75e   : > { %2173 = vmatmul.mubr.msk.bf16.vlgmr.msra.gmra.mrb[16].mxu0 %vm963_vm2, %v1337_v57  ;;  %v2045_v57 = vld [vmem:[#allocation13] ss:$0 sm:$0xff] }
 0x75f   : > { %2183 = vmatpush3.bf16.xpose.msra.mxu0 %v1442_v58  ;;  %2184 = vmatprep.mubr.msk.bf16.mxu0 %vm2730_vm0, %v2729_v0 }
 0x760   : > { %2194 = vmatprep.subr.bf16.mxu0 %v2729_v0 }
 0x766   : > { %2185 = vmatmul.mubr.msk.bf16.vlgmr.msra.gmra.mrb[20].mxu0 %vm963_vm2, %v1435_v21  ;;  %v2046_v21 = vld [vmem:[#allocation14] ss:$0 sm:$0xff] }
 0x767   : > { %2196 = vmatprep.mubr.msk.bf16.mxu0 %vm2730_vm0, %v2729_v0 }
 0x831   : > { %v1380_v60 = vpop.f32.mrb[16].mxu0 }
 0x832   : > { %v1386_v61 = vpack.c.bf16 %v1380_v60, %v1380_v60  ;;  %v2174_v62 = vpop.f32.mrb[17].mxu0 }
 0x833   : > { %v1383_v63 = vpop.f32.mrb[18].mxu0  ;;  %v2374_v62 = vld [vmem:[%s3364_s15 + $0x18] sm:$0xff]  }
 0x834   : > { %v2175_v1 = vpop.f32.mrb[19].mxu0  ;;  %2179 = vmatmul.mubr.msk.bf16.vlgmr.msra.gmra.mrb[24].mxu1 %vm963_vm2, %v1386_v61  ;;  %v2373_v61 = vld [vmem:[%s3364_s15 + $0x10] sm:$0xff]   ;;  %v2047_v63 = vld [vmem:[%s3363_s14] ss:$0 sm:$0xff] }
 0x835   : > { %2190 = vmatprep.mubr.msk.bf16.mxu1 %vm2730_vm0, %v2729_v0 }
 0x839   : > { %v1478_v2 = vpop.f32.mrb[20].mxu0 }
 0x83a   : > { %v1479_v4 = vadd.f32 %v1478_v2, %v3163_v31  ;;  %v2186_v5 = vpop.f32.mrb[21].mxu0  ;;  %v959_v31 = vld [vmem:[%s3358_s9 + $0xc] sm:$0xf] }
 0x83b   : > { %v1481_v6 = vpop.f32.mrb[22].mxu0  ;;  %v1549_v14 = vsel %vm1025_vm3, %v959_v31, 0 }
 0x83c   : > { %v2187_v7 = vpop.f32.mrb[23].mxu0  ;;  %v1484_v8 = vsel %vm963_vm2, %v1479_v4, -inf  ;;  %2195 = vmatpush3.bf16.msra.mxu0 %v1549_v14 }
 0x83d   : > { %1485 = vmax.xlane.f32.xlu0 %v1484_v8  ;;  %2208 = vmatprep.subr.bf16.mxu0 %v2729_v0 }
 0x8ca   : > { %v1486_v9 = vpop.xlane.xlu0 %1485 }
 0x8cb   : > { %v1487_v10 = vsub.f32 %v1479_v4, %v1486_v9 }
 0x8cd   : > { %v1488_v11 = vmul.f32 1.442695, %v1487_v10 }
 0x8cf   : > { %2387 = vpow2.f32 %v1488_v11 }
 0x8d9   : > { %v2388_v12 = vpop.eup %2387 }
 0x8da   : > { %v1490_v13 = vsel %vm963_vm2, %v2388_v12, 0.0 }
 0x8db   : > { %1491 = vadd.xlane.f32.xlu1 %v1490_v13 }
 0x8ec   : > { %1496 = vrot.lane.b32.xlu1 %v3170_v55, %s2733_s1  ;;  %s740_s1 = scalar_lea.vmem [#allocation16], %s2017_s17  ;;  %s2623_s17 = sshll.u32 %s2734_s21, 4  ;;  %s2624_s17 = int_to_ptr.vmem [resolvable:$false] %s2623_s17 }
 0x8ed   : > { %s1832_s22 = sshll.u32 %s740_s1, 4  ;;  %s3303_s22 = int_to_ptr.vmem [resolvable:$true] %s1832_s22 }
 0x8ee   : > { %s2619_s29 = scalar_lea.vmem %s3303_s22, 128  ;;  %p2626_p2 = scmp.lt.s32.totalorder %s3303_s22, %s2624_s17 }
 0x8ef   : > { %p2620_p1 = scmp.ne.s32.totalorder %s3303_s22, %s2619_s29 }
 0x8f1   : > { %p2621_p10 = pnand %p2620_p1, %p3425_p8 }
 0x8f3   : > { %p2622_p11 = pneg %p2621_p10 }
 0x907   : > { %v1427_v15 = vpop.f32.mrb[24].mxu1 }
 0x908   : > { %v1433_v16 = vadd.f32 %v1427_v15, %v3212_v37  ;;  %v2180_v17 = vpop.f32.mrb[25].mxu1 }
 0x909   : > { %v1430_v18 = vpop.f32.mrb[26].mxu1 }
 0x90a   : > { %v2181_v19 = vpop.f32.mrb[27].mxu1 }
 0x968   : > { %v1492_v20 = vpop.xlane.xlu1 %1491 }
 0x969   : > { %2389 = vrcp.f32 %v1492_v20 }
 0x96c   : > { %v1497_v22 = vpop.permute.xlu1 %1496 }
 0x96d   : > { %v1502_v55 = vsel %vm1025_vm3, %v1497_v22, 0 }
 0x96e   : > { %2189 = vmatpush3.bf16.msra.mxu1 %v1502_v55 }
 0x96f   : > { %2200 = vmatprep.subr.bf16.mxu1 %v2729_v0 }
 0x973   : > { %v2390_v23 = vpop.eup %2389 }
 0x974   : > { %v1494_v25 = vmul.f32 %v2390_v23, %v2388_v12 }
 0x976   : > { %v1495_v26 = vpack.c.bf16 %v1494_v25, %v1494_v25 }
 0x978   : > { %2191 = vmatmul.mubr.msk.bf16.vlgmr.msra.gmra.mrb[28].mxu1 %vm963_vm2, %v1495_v26 }
 0x979   : > { %2204 = vmatprep.mubr.msk.bf16.mxu1 %vm2730_vm0, %v2729_v0  ;;  %2201 = vmatpush3.bf16.msra.mxu1 %v2369_v44 }
 0x97a   : > { %2202 = vmatprep.subr.bf16.mxu1 %v2729_v0 }
 0x97d   : > { %2203 = vmatpush3.bf16.msra.mxu1 %v2370_v45 }
 0xa4b   : > { %v1538_v27 = vpop.f32.mrb[28].mxu1 }
 0xa4c   : > { %v1544_v28 = vpack.c.bf16 %v1538_v27, %v1538_v27  ;;  %v2192_v29 = vpop.f32.mrb[29].mxu1  ;;  %v2057_v27 = vld [vmem:[%s3421_s23] ss:$0 sm:$0xff]  ;;  %s2625_s23 = scalar_lea.vmem %s2624_s17, 256 }
 0xa4d   : > { %v1541_v30 = vpop.f32.mrb[30].mxu1  ;;  %v2058_v29 = vld [vmem:[%s3422_s28] ss:$0 sm:$0xff]  ;;  %p2627_p3 = scmp.lt.s32.totalorder %s2625_s23, %s2619_s29 }
 0xa4e   : > { %v2193_v32 = vpop.f32.mrb[31].mxu1  ;;  %2197 = vmatmul.mubr.msk.bf16.vlgmr.msra.gmra.mrb[24].mxu0 %vm963_vm2, %v1544_v28 }
 0xa4f   : > { %2216 = vmatprep.mubr.msk.bf16.mxu0 %vm2730_vm0, %v2729_v0  ;;  %p2628_p5 = por %p2627_p3, %p2626_p2 }
 0xa51   : > { %p2629_p6 = pnand %p2628_p5, %p2622_p11 }
 0xb21   : > { %v1585_v33 = vpop.f32.mrb[24].mxu0 }
 0xb22   : > { %v1591_v35 = vadd.f32 %v1585_v33, %v1433_v16  ;;  %v2198_v36 = vpop.f32.mrb[25].mxu0 }
 0xb23   : > { %v1588_v37 = vpop.f32.mrb[26].mxu0 }
 0xb24   : > { %v1599_v38 = vadd.f32 %v2044_v34, %v1591_v35  ;;  %v2199_v39 = vpop.f32.mrb[27].mxu0 }
 0xb26   : > { %v1600_v40 = vadd.f32 %v1599_v38, %v3118_v3  ;;  %v2371_v3 = vld [vmem:[%s3364_s15] sm:$0xff]  }
 0xb27   : > { %2209 = vmatpush3.bf16.msra.mxu0 %v2371_v3 }
 0xb28   : > { %v1603_v41 = vsel %vm782_vm1, %v1600_v40, 0.0  ;;  %v1606_v42 = vmul.f32 %v1600_v40, %v1600_v40  ;;  %2210 = vmatprep.subr.bf16.mxu0 %v2729_v0 }
 0xb29   : > { %1604 = vadd.xlane.f32.xlu1 %v1603_v41 }
 0xb2a   : > { %v1607_v43 = vsel %vm782_vm1, %v1606_v42, 0.0 }
 0xb2b   : > { %1608 = vadd.xlane.f32.xlu0 %v1607_v43  ;;  %2211 = vmatpush3.bf16.msra.mxu0 %v2372_v46 }
 0xb2c   : > { %2212 = vmatprep.subr.bf16.mxu0 %v2729_v0 }
 0xb2f   : > { %2213 = vmatpush3.bf16.msra.mxu0 %v2373_v61 }
 0xb30   : > { %2214 = vmatprep.subr.bf16.mxu0 %v2729_v0  ;;  %v2051_v0 = vld [vmem:[%s3365_s16] ss:$0 sm:$0xff] }
 0xb33   : > { %2215 = vmatpush3.bf16.msra.mxu0 %v2374_v62 }
 0xbb6   : > { %v1605_v47 = vpop.xlane.xlu1 %1604 }
 0xbb7   : > { %v1610_v48 = vmul.f32 0.03125, %v1605_v47 }
 0xbb8   : > { %v1609_v49 = vpop.xlane.xlu0 %1608 }
 0xbb9   : > { %v1612_v50 = vmul.f32 %v1610_v48, %v1610_v48  ;;  %v1611_v51 = vmul.f32 0.03125, %v1609_v49  ;;  %v1614_v54 = vsub.f32 %v1600_v40, %v1610_v48 }
 0xbbb   : > { %v1613_v52 = vsub.f32 %v1611_v51, %v1612_v50 }
 0xbbd   : > { %v1615_v53 = vadd.f32 1e-06, %v1613_v52 }
 0xbbf   : > { %2391 = vrsqrt.f32 %v1615_v53 }
 0xbc9   : > { %v2392_v56 = vpop.eup %2391 }
 0xbca   : > { %v1617_v58 = vmul.f32 %v2392_v56, %v1614_v54 }
 0xbcc   : > { %v1624_v24 = vmul.f32 %v2045_v57, %v1617_v58 }
 0xbce   : > { %v1631_v59 = vadd.f32 %v2046_v21, %v1624_v24 }
 0xbd0   : > { %v1632_v60 = vpack.c.bf16 %v1631_v59, %v1631_v59 }
 0xbd2   : > { %2205 = vmatmul.mubr.msk.bf16.vlgmr.msra.gmra.mrb[32].mxu1 %vm782_vm1, %v1632_v60 }
 0xca5   : > { %v1693_v1 = vpop.f32.mrb[32].mxu1 }
 0xca6   : > { %v1694_v2 = vadd.f32 %v2047_v63, %v1693_v1  ;;  %v2206_v4 = vpop.f32.mrb[33].mxu1 }
 0xca7   : > { %v1696_v5 = vpop.f32.mrb[34].mxu1 }
 0xca8   : > { %v1699_v6 = vmax.f32 %v1694_v2, 0.0  ;;  %v2207_v7 = vpop.f32.mrb[35].mxu1 }
 0xcaa   : > { %v1700_v8 = vpack.c.bf16 %v1699_v6, %v1699_v6 }
 0xcac   : > { %2217 = vmatmul.mubr.msk.bf16.vlgmr.msra.gmra.mrb[28].mxu0 %vm1740_vm4, %v1700_v8 }
 0xd7f   : > { %v1778_v9 = vpop.f32.mrb[28].mxu0 }
 0xd80   : > { %v1779_v10 = vadd.f32 %v2051_v0, %v1778_v9  ;;  %v2218_v11 = vpop.f32.mrb[29].mxu0 }
 0xd81   : > { %v1781_v12 = vpop.f32.mrb[30].mxu0 }
 0xd82   : > { %v1784_v13 = vadd.f32 %v1779_v10, %v1631_v59  ;;  %v2219_v31 = vpop.f32.mrb[31].mxu0 }
 0xd84   : > { %v1787_v14 = vsel %vm782_vm1, %v1784_v13, 0.0  ;;  %v1790_v15 = vmul.f32 %v1784_v13, %v1784_v13 }
 0xd85   : > { %1788 = vadd.xlane.f32.xlu0 %v1787_v14 }
 0xd86   : > { %v1791_v16 = vsel %vm782_vm1, %v1790_v15, 0.0 }
 0xd89   : > { %1792 = vadd.xlane.f32.xlu0 %v1791_v16 }
 0xe12   : > { %v1789_v17 = vpop.xlane.xlu0 %1788 }
 0xe13   : > { %v1794_v18 = vmul.f32 0.03125, %v1789_v17 }
 0xe15   : > { %v1796_v20 = vmul.f32 %v1794_v18, %v1794_v18  ;;  %v1798_v25 = vsub.f32 %v1784_v13, %v1794_v18 }
 0xe16   : > { %v1793_v19 = vpop.xlane.xlu0 %1792 }
 0xe17   : > { %v1795_v22 = vmul.f32 0.03125, %v1793_v19 }
 0xe19   : > { %v1797_v55 = vsub.f32 %v1795_v22, %v1796_v20 }
 0xe1b   : > { %v1799_v23 = vadd.f32 1e-06, %v1797_v55 }
 0xe1d   : > { %2393 = vrsqrt.f32 %v1799_v23 }
 0xe27   : > { %v2394_v26 = vpop.eup %2393 }
 0xe28   : > { %v1801_v28 = vmul.f32 %v2394_v26, %v1798_v25 }
 0xe2a   : > { %v1808_v30 = vmul.f32 %v2057_v27, %v1801_v28 }
 0xe2c   : > { %v1815_v32 = vadd.f32 %v2058_v29, %v1808_v30 }
 0xe2e   : > { %1816 = vst.msk [vmem:[%s740_s1] sm:$0xff] %vm782_vm1, %v1815_v32 }
 0xe2f   : > { %2632 = shalt.err (!%p2629_p6)
}
 0xe30   : > { %s2633_s27 = scalar_lea.hbm %s3301_s4, 128  ;;  %s2637_s28 = scalar_lea.hbm %s3424_s2, 256 }
 0xe31   : > { %p2634_p7 = scmp.ne.s32.totalorder %s3301_s4, %s2633_s27  ;;  %p2638_p0 = scmp.lt.u32.totalorder %s3301_s4, %s3424_s2 }
 0xe32   : > { %p2639_p4 = scmp.lt.u32.totalorder %s2637_s28, %s2633_s27  ;;  %p2641_p1 = scmp.lt.u32.totalorder %s2633_s27, %s3301_s4 }
 0xe33   : > { %p2635_p9 = pnand %p2634_p7, %p3425_p8 }
 0xe34   : > { %p2640_p13 = por %p2639_p4, %p2638_p0 }
 0xe35   : > { %p2636_p12 = pneg %p2635_p9 }
 0xe36   : > { %p2642_p10 = por %p2641_p1, %p2640_p13 }
 0xe38   : > { %p2643_p11 = pnand %p2642_p10, %p2636_p12 }
 0xe3a   : > { %2646 = shalt.err (!%p2643_p11)
}
 0xe3b   : > { %2252 = dma.vmem_to_hbm [thread:$0]  (%p3425_p8), %s3303_s22, 128, %s3301_s4, %s1818_s24  }
 0xe3c PF: > { %s3426_s3 = sld [smem:[#allocation27_spill]]  ;;  %s3427_s19 = sld [smem:[#allocation23_spill]] }
 0xe3d   : > { %s3428_s30 = sld [smem:[#allocation30_spill]] }
 0xe42   : > { %p2299_p2 = scmp.ge.s32.totalorder %s3426_s3, 2  ;;  %s1844_s29 = sand.u32 1, %s3427_s19  }
 0xe43   : > { %p3429_p3 = scmp.ne.s32.totalorder %s3428_s30, 0  ;;  %s1845_s21 = scalar_lea.sflag [#allocation4], %s1844_s29 }
 0xe45   : > { %p2280_p5 = pnand %p2299_p2, %p3429_p3 }
 0xe47   : > { %2692 = dma.done.wait (!%p2280_p5), %s1845_s21, 128  }
 0xe48   : > { %2694 = vsyncadd (!%p2280_p5), %s1845_s21, 4294967168  ;;  %s37_s22 = sadd.s32 1, %s3426_s3   ;;  %s3430_s0 = sld [smem:[#allocation24_spill]] }
 0xe49   : > { %p34_p6 = scmp.ge.s32.totalorder %s37_s22, 4   ;;  %s3431_s30 = sld [smem:[#allocation25_spill]] }
 0xe4a   : > { %s3432_s20 = sld [smem:[#allocation31_spill]]  ;;  %s3433_s21 = sld [smem:[#allocation26_spill]] }
 0xe4b   : > { %s3434_s1 = sld [smem:[#allocation28_spill]]  ;;  %36 = sbr.rel (!%p34_p6) target bundleno = 19 (0x13), region = 168 }
 0xe52   :  { %1850 = vsyncpa [#allocation3], 1 }
 0xe53   :  { %1852 = vsyncpa [#allocation3 + $0x1], 1 }
 0xe54   :  { %1853 = vsyncpa [#allocation6], 1 }
 0xe55   :  { %1854 = vsyncpa [#allocation9], 1 }
 0xe56   :  { %1855 = vsyncpa [#allocation12], 1 }
 0xe57   :  { %1856 = vsyncpa [#allocation15], 1 }
 0xe58   :  { %1857 = vsyncpa [#allocation4], 1 }
 0xe59   :  { %1859 = vsyncpa [#allocation4 + $0x1], 1 }

</bundles_post_ra>
